<compile_context>
chip_gen: v6e
topology: v6e:2x2x1
jax: 0.10.0
libtpu: 0.0.40
codegen_flags: <defaults>
</compile_context>

<pallas_src>
from functools import partial

import jax
import jax.numpy as jnp
from jax.experimental import pallas as pl
from jax.experimental.pallas import tpu as pltpu

# ----------------- configuration (original values in comments) -----------------
B      = 2     # original: 8     (batch, hard-coded in forward)
H      = 24    # original: 240
W      = 20    # original: 180
C_IN   = 64    # original: 64
G      = 4     # original: 4     -> first Linear in_features = 64*4 = 256 (exact)
PAD_H  = 4     # original: 8     (240 + 16 -> 256); here 24 + 8 -> 32
PAD_W  = 6     # original: 38    (180 + 76 -> 256); here 20 + 12 -> 32
FEAT_C = 32    # synthetic backbone feature channels
FH = FW = 8    # rot-head output spatial size (original: 64 x 64)
ROT_C  = 4     # rot-head output channels (original: 4)
HW       = FH * FW           # 64
LIN2_IN  = ROT_C * HW        # original: 64 * 64 * 4 = 16384; here 256
LIN2_OUT = 8 * 3             # 24 (exact)


# ------------------- kernel 1: big Linear(256 -> 3) + ReLU ----------------------
def _linear_relu_kernel(x_ref, w_ref, b_ref, o_ref, *, rows_total, block_rows,
                        mask_tail):
    # f32 tile streamed from HBM; cast to bf16 in-register just before the MXU dot
    # (f32 accumulation).  No separate XLA cast pass -> no extra HBM traffic.
    x = x_ref[...].astype(jnp.bfloat16)
    acc = jnp.dot(x, w_ref[...], preferred_element_type=jnp.float32)
    out = jnp.maximum(acc + b_ref[...], 0.0)
    if mask_tail:
        # Ragged last tile: zero rows beyond M (their garbage would be dropped on
        # writeback anyway, but keep it clean / NaN-free).
        i = pl.program_id(0)
        row = i * block_rows + jax.lax.broadcasted_iota(jnp.int32, out.shape, 0)
        out = jnp.where(row < rows_total, out, 0.0)
    o_ref[...] = out.astype(o_ref.dtype)


def _row_tiling(m, cap=4096):
    """Pick the row tile (tm) for kernel 1.

    Prefer the largest multiple-of-16 divisor of m that is <= cap AND leaves at
    least 2 grid steps (so a v7x megacore can shard the 'parallel' axis).  If no
    such divisor exists, pick a roughly-even >=2-step tile and let the kernel mask
    the ragged tail (never pad the activation in the wrapper).
    """
    if m <= 16:
        return max(8, ((m + 7) // 8) * 8)
    start = min(cap, max(16, ((m // 2) // 16) * 16))
    for t in range(start, 15, -16):
        if m % t == 0:
            return t
    half = (m + 1) // 2
    return min(cap, max(16, ((half + 15) // 16) * 16))


def linear_relu_pallas(x, w, b):
    """relu(x @ w + b); x:(M,K) f32, w:(K,N), b:(N,) -> f32 (M,N).

    HBM-bound on reading x (f32, read exactly once).  Weights are cast to bf16
    (tiny); the per-tile activation cast happens inside the kernel.
    """
    M, K = x.shape
    N = w.shape[1]
    tm = _row_tiling(M)
    grid = (pl.cdiv(M, tm),)
    mask_tail = (M % tm) != 0
    kernel = partial(_linear_relu_kernel, rows_total=M, block_rows=tm,
                     mask_tail=mask_tail)
    cost = pl.CostEstimate(
        flops=2 * M * K * N,
        transcendentals=0,
        bytes_accessed=M * K * x.dtype.itemsize + K * N * 2 + M * N * 4,
    )
    return pl.pallas_call(
        kernel,
        out_shape=jax.ShapeDtypeStruct((M, N), jnp.float32),
        grid=grid,
        in_specs=[
            # Large f32 tiles; default double-buffering hides the DMA.  (If xprof
            # still shows exposed DMA on v6e, add pipeline_mode=pl.Buffered(3).)
            pl.BlockSpec((tm, K), lambda i: (i, 0)),
            pl.BlockSpec((K, N), lambda i: (0, 0)),
            pl.BlockSpec((1, N), lambda i: (0, 0)),
        ],
        out_specs=pl.BlockSpec((tm, N), lambda i: (i, 0)),
        compiler_params=pltpu.CompilerParams(
            dimension_semantics=("parallel",),
            vmem_limit_bytes=32 * 1024 * 1024,   # >= v5e's 16 MiB scoped default
        ),
        cost_estimate=cost,
    )(x, w.astype(jnp.bfloat16), b.reshape(1, N).astype(jnp.float32))


# ---------------- kernel 2: fused tail (backbone/heads/linear2) -----------------
def _tail_kernel(pooled_ref, wb_ref, bb_ref, wr_ref, br_ref, wt_ref, bt_ref,
                 w2t_ref, b2_ref, seg_ref, cc_out_ref, trans_ref):
    # Single invocation; everything stays resident in VMEM/vregs.
    # Row orientation: rows = b*HW + s (all batches at once), channels on lanes.
    pooled = pooled_ref[...]                                        # (B*HW, 3)
    # backbone 1x1 conv + ReLU over all batches in one dot
    feat = jnp.maximum(
        jnp.dot(pooled, wb_ref[...], preferred_element_type=jnp.float32)
        + bb_ref[...], 0.0)                                         # (B*HW, FEAT_C)
    # rot head 1x1 conv over all batches in one dot
    cc = (jnp.dot(feat, wr_ref[...], preferred_element_type=jnp.float32)
          + br_ref[...])                                            # (B*HW, ROT_C)
    # trans head: per-batch global average pool as one matmul with the
    # batch-segment indicator matrix, then the linear layer.
    seg = seg_ref[...]                                              # (B, B*HW)
    gap = jnp.dot(seg, feat, preferred_element_type=jnp.float32) * (1.0 / HW)
    trans_ref[...] = (jnp.dot(gap, wt_ref[...],
                              preferred_element_type=jnp.float32)
                      + bt_ref[...]).astype(trans_ref.dtype)        # (B, 3)
    # linear2 over the NCHW-flattened cc maps (row index = c*HW + s), vectorized
    # over batch AND channel: ROT_C broadcast-FMAs (VPU) followed by one matmul
    # with the segment matrix.  No Python batch loop, no serial 1-row MXU chain.
    p = cc[:, 0:1] * w2t_ref[0]                                     # (B*HW, LIN2_OUT)
    for c in range(1, ROT_C):                                       # ROT_C = 4, static
        p = p + cc[:, c:c + 1] * w2t_ref[c]
    cc_out_ref[...] = (jnp.dot(seg, p, preferred_element_type=jnp.float32)
                       + b2_ref[...]).astype(cc_out_ref.dtype)      # (B, LIN2_OUT)


def tail_fused_pallas(pooled_r, params, seg, w2t):
    vmem = pl.BlockSpec(memory_space=pltpu.MemorySpace.VMEM)
    cc_out, trans = pl.pallas_call(
        _tail_kernel,
        out_shape=(jax.ShapeDtypeStruct((B, LIN2_OUT), jnp.float32),
                   jax.ShapeDtypeStruct((B, 3), jnp.float32)),
        in_specs=[vmem] * 10,
        out_specs=(vmem, vmem),
    )(pooled_r,
      params["wb"], params["bb"].reshape(1, FEAT_C),
      params["wr"], params["br"].reshape(1, ROT_C),
      params["wt"], params["bt"].reshape(1, 3),
      w2t, params["b2"].reshape(1, LIN2_OUT), seg)
    return cc_out, trans


# --------------------------------- CDPN forward ---------------------------------
def cdpn_forward(x, params):
    # x: (B, H, W, C_IN, G) -- matches the torch input before flatten(start_dim=3)
    # --- x = torch.flatten(x, 3); x = x.view(B*H*W, 64*4) ---
    # Stays f32: the bf16 cast happens per-tile INSIDE kernel 1 (no extra HBM pass).
    x2 = x.reshape(B * H * W, C_IN * G)
    # --- x = self.relu(self.linear(x)) ---
    y = linear_relu_pallas(x2, params["w1"], params["b1"])            # (B*H*W, 3) f32
    # --- x.view(B,H,W,3).permute(0,3,1,2); F.pad(x, (PAD_W,PAD_W,PAD_H,PAD_H)) ---
    # Done directly in NHWC (no NCHW round trip): pad the H and W axes.
    y = jnp.pad(y.reshape(B, H, W, 3),
                ((0, 0), (PAD_H, PAD_H), (PAD_W, PAD_W), (0, 0)))     # (B,32,32,3)

    # TODO(synk): backbone / rot_head_net / trans_head_net are constructor-injected
    # modules not defined in CDPN.py; deterministic synthetic stand-ins (8x8 avg-pool
    # + 1x1 convs + GAP-linear) with matching interface shapes are used here.
    # TODO(synk): pad + 8x8 block-mean remain as two tiny XLA ops; fusing them into
    # the kernel-1 epilogue needs a scatter / pooling matrix that would add HBM
    # traffic comparable to the savings.
    Hp, Wp = H + 2 * PAD_H, W + 2 * PAD_W
    pooled = y.reshape(B, FH, Hp // FH, FW, Wp // FW, 3).mean(axis=(2, 4))  # (B,8,8,3)
    pooled_r = pooled.reshape(B * HW, 3)     # rows = b*HW + (h*FW + w); no transpose

    # Shape/parameter-only constants for the fused tail (tiny).
    seg = (jnp.arange(B * HW, dtype=jnp.int32)[None, :] // HW
           == jnp.arange(B, dtype=jnp.int32)[:, None]).astype(jnp.float32)  # (B, B*HW)
    # w2t[c, b*HW + s, o] = w2[c*HW + s, o]  (NCHW-flatten order preserved)
    w2t = jnp.tile(params["w2"].reshape(ROT_C, HW, LIN2_OUT), (1, B, 1))

    # Fused: backbone 1x1 -> rot_head 1x1 -> trans_head (GAP+linear) -> linear2.
    cc_out, trans = tail_fused_pallas(pooled_r, params, seg, w2t)

    # --- cc_maps = cc_maps.view(B, 1, 8, 3) ---
    return cc_out.reshape(B, 1, 8, 3), trans


def init_params(key):
    ks = jax.random.split(key, 10)
    f32 = jnp.float32
    return {
        # nn.Linear(64*4, 3)
        "w1": jax.random.normal(ks[0], (C_IN * G, 3), f32) * 0.05,
        "b1": jax.random.normal(ks[1], (3,), f32) * 0.05,
        # synthetic backbone 1x1 conv 3 -> FEAT_C
        "wb": jax.random.normal(ks[2], (3, FEAT_C), f32) * 0.1,
        "bb": jax.random.normal(ks[3], (FEAT_C,), f32) * 0.05,
        # synthetic rot head 1x1 conv FEAT_C -> ROT_C
        "wr": jax.random.normal(ks[4], (FEAT_C, ROT_C), f32) * 0.1,
        "br": jax.random.normal(ks[5], (ROT_C,), f32) * 0.05,
        # synthetic trans head linear FEAT_C -> 3
        "wt": jax.random.normal(ks[6], (FEAT_C, 3), f32) * 0.1,
        "bt": jax.random.normal(ks[7], (3,), f32) * 0.05,
        # nn.Linear(64*64*4, 8*3)  (scaled: LIN2_IN -> 24), acting on the
        # NCHW-flattened cc maps (row index = c*HW + h*FW + w).
        "w2": jax.random.normal(ks[8], (LIN2_IN, LIN2_OUT), f32) * 0.02,
        "b2": jax.random.normal(ks[9], (LIN2_OUT,), f32) * 0.02,
    }


if __name__ == "__main__":
    key = jax.random.PRNGKey(0)
    kx, kp = jax.random.split(key)
    x = jax.random.normal(kx, (B, H, W, C_IN, G), dtype=jnp.float32)
    params = init_params(kp)

    cc_maps, trans = jax.jit(cdpn_forward)(x, params)
    jax.block_until_ready((cc_maps, trans))

    assert cc_maps.shape == (B, 1, 8, 3) and cc_maps.dtype == jnp.float32
    assert trans.shape == (B, 3) and trans.dtype == jnp.float32
    assert bool(jnp.all(jnp.isfinite(cc_maps))) and bool(jnp.all(jnp.isfinite(trans)))
    print("KERNEL_OK")
</pallas_src>

<mosaic_0001>
module attributes {stable_mosaic.version = 11 : i64} {
  func.func @_linear_relu_kernel(%arg0: i32, %arg1: memref<480x256xf32, #tpu.memory_space<vmem>>, %arg2: memref<256x3xbf16, #tpu.memory_space<vmem>>, %arg3: memref<1x3xf32, #tpu.memory_space<vmem>>, %arg4: memref<480x3xf32, #tpu.memory_space<vmem>>) attributes {dimension_semantics = [#tpu.dimension_semantics<parallel>], iteration_bounds = array<i64: 2>, scalar_prefetch = 0 : i64, scratch_operands = 0 : i64, tpu.core_type = #tpu.core_type<tc>, window_params = [{transform_indices = @transform_0, window_bounds = array<i64: 480, 256>}, {pipeline_mode = #tpu.pipeline_mode<synchronous>, transform_indices = @transform_1, window_bounds = array<i64: 256, 3>}, {pipeline_mode = #tpu.pipeline_mode<synchronous>, transform_indices = @transform_2, window_bounds = array<i64: 1, 3>}, {transform_indices = @transform_3, window_bounds = array<i64: 480, 3>}]} {
    %c0 = arith.constant 0 : index
    %c0_0 = arith.constant 0 : index
    %0 = vector.load %arg1[%c0, %c0_0] : memref<480x256xf32, #tpu.memory_space<vmem>>, vector<480x256xf32>
    %1 = arith.truncf %0 : vector<480x256xf32> to vector<480x256xbf16>
    %c0_1 = arith.constant 0 : index
    %c0_2 = arith.constant 0 : index
    %2 = vector.load %arg2[%c0_1, %c0_2] : memref<256x3xbf16, #tpu.memory_space<vmem>>, vector<256x3xbf16>
    %cst = arith.constant dense<0.000000e+00> : vector<480x3xf32>
    %3 = tpu.matmul %1, %2, %cst {dimension_numbers = #tpu.dot_dimension_numbers<[1], [0], [0], [1], [0, 0, 1, 1], [], []>} : vector<480x256xbf16>, vector<256x3xbf16>, vector<480x3xf32> -> vector<480x3xf32>
    %c0_3 = arith.constant 0 : index
    %c0_4 = arith.constant 0 : index
    %4 = vector.load %arg3[%c0_3, %c0_4] : memref<1x3xf32, #tpu.memory_space<vmem>>, vector<1x3xf32>
    %5 = vector.broadcast %4 : vector<1x3xf32> to vector<480x3xf32>
    %6 = arith.addf %3, %5 : vector<480x3xf32>
    %cst_5 = arith.constant 0.000000e+00 : f32
    %7 = vector.broadcast %cst_5 : f32 to vector<480x3xf32>
    %8 = arith.maximumf %6, %7 : vector<480x3xf32>
    %c0_6 = arith.constant 0 : index
    %c0_7 = arith.constant 0 : index
    %9 = vector.load %arg4[%c0_6, %c0_7] : memref<480x3xf32, #tpu.memory_space<vmem>>, vector<480x3xf32>
    tpu.vector_store %arg4[%c0_6, %c0_7], %8 {strides = array<i32>} : memref<480x3xf32, #tpu.memory_space<vmem>>, vector<480x3xf32>,
    return
  }
  func.func @transform_0(%arg0: i32) -> (i32, i32) {
    %c0_i32 = arith.constant 0 : i32
    %c0_i32_0 = arith.constant 0 : i32
    return %arg0, %c0_i32 : i32, i32
  }
  func.func @transform_1(%arg0: i32) -> (i32, i32) {
    %c0_i32 = arith.constant 0 : i32
    %c0_i32_0 = arith.constant 0 : i32
    %c0_i32_1 = arith.constant 0 : i32
    return %c0_i32, %c0_i32_0 : i32, i32
  }
  func.func @transform_2(%arg0: i32) -> (i32, i32) {
    %c0_i32 = arith.constant 0 : i32
    %c0_i32_0 = arith.constant 0 : i32
    %c0_i32_1 = arith.constant 0 : i32
    return %c0_i32, %c0_i32_0 : i32, i32
  }
  func.func @transform_3(%arg0: i32) -> (i32, i32) {
    %c0_i32 = arith.constant 0 : i32
    %c0_i32_0 = arith.constant 0 : i32
    return %arg0, %c0_i32 : i32, i32
  }
}

module attributes {stable_mosaic.version = 11 : i64} {
  func.func @_tail_kernel(%arg0: memref<128x3xf32, #tpu.memory_space<vmem>>, %arg1: memref<3x32xf32, #tpu.memory_space<vmem>>, %arg2: memref<1x32xf32, #tpu.memory_space<vmem>>, %arg3: memref<32x4xf32, #tpu.memory_space<vmem>>, %arg4: memref<1x4xf32, #tpu.memory_space<vmem>>, %arg5: memref<32x3xf32, #tpu.memory_space<vmem>>, %arg6: memref<1x3xf32, #tpu.memory_space<vmem>>, %arg7: memref<4x128x24xf32, #tpu.memory_space<vmem>>, %arg8: memref<1x24xf32, #tpu.memory_space<vmem>>, %arg9: memref<2x128xf32, #tpu.memory_space<vmem>>, %arg10: memref<2x24xf32, #tpu.memory_space<vmem>>, %arg11: memref<2x3xf32, #tpu.memory_space<vmem>>) attributes {dimension_semantics = [], scalar_prefetch = 0 : i64, scratch_operands = 0 : i64, tpu.core_type = #tpu.core_type<tc>} {
    %c0 = arith.constant 0 : index
    %c0_0 = arith.constant 0 : index
    %0 = vector.load %arg0[%c0, %c0_0] : memref<128x3xf32, #tpu.memory_space<vmem>>, vector<128x3xf32>
    %c0_1 = arith.constant 0 : index
    %c0_2 = arith.constant 0 : index
    %1 = vector.load %arg1[%c0_1, %c0_2] : memref<3x32xf32, #tpu.memory_space<vmem>>, vector<3x32xf32>
    %cst = arith.constant dense<0.000000e+00> : vector<128x32xf32>
    %2 = tpu.matmul %0, %1, %cst {dimension_numbers = #tpu.dot_dimension_numbers<[1], [0], [0], [1], [0, 0, 1, 1], [], []>} : vector<128x3xf32>, vector<3x32xf32>, vector<128x32xf32> -> vector<128x32xf32>
    %c0_3 = arith.constant 0 : index
    %c0_4 = arith.constant 0 : index
    %3 = vector.load %arg2[%c0_3, %c0_4] : memref<1x32xf32, #tpu.memory_space<vmem>>, vector<1x32xf32>
    %4 = vector.broadcast %3 : vector<1x32xf32> to vector<128x32xf32>
    %5 = arith.addf %2, %4 : vector<128x32xf32>
    %cst_5 = arith.constant 0.000000e+00 : f32
    %6 = vector.broadcast %cst_5 : f32 to vector<128x32xf32>
    %7 = arith.maximumf %5, %6 : vector<128x32xf32>
    %c0_6 = arith.constant 0 : index
    %c0_7 = arith.constant 0 : index
    %8 = vector.load %arg3[%c0_6, %c0_7] : memref<32x4xf32, #tpu.memory_space<vmem>>, vector<32x4xf32>
    %cst_8 = arith.constant dense<0.000000e+00> : vector<128x4xf32>
    %9 = tpu.matmul %7, %8, %cst_8 {dimension_numbers = #tpu.dot_dimension_numbers<[1], [0], [0], [1], [0, 0, 1, 1], [], []>} : vector<128x32xf32>, vector<32x4xf32>, vector<128x4xf32> -> vector<128x4xf32>
    %c0_9 = arith.constant 0 : index
    %c0_10 = arith.constant 0 : index
    %10 = vector.load %arg4[%c0_9, %c0_10] : memref<1x4xf32, #tpu.memory_space<vmem>>, vector<1x4xf32>
    %11 = vector.broadcast %10 : vector<1x4xf32> to vector<128x4xf32>
    %12 = arith.addf %9, %11 : vector<128x4xf32>
    %c0_11 = arith.constant 0 : index
    %c0_12 = arith.constant 0 : index
    %13 = vector.load %arg9[%c0_11, %c0_12] : memref<2x128xf32, #tpu.memory_space<vmem>>, vector<2x128xf32>
    %cst_13 = arith.constant dense<0.000000e+00> : vector<2x32xf32>
    %14 = tpu.matmul %13, %7, %cst_13 {dimension_numbers = #tpu.dot_dimension_numbers<[1], [0], [0], [1], [0, 0, 1, 1], [], []>} : vector<2x128xf32>, vector<128x32xf32>, vector<2x32xf32> -> vector<2x32xf32>
    %cst_14 = arith.constant 1.562500e-02 : f32
    %15 = vector.broadcast %cst_14 : f32 to vector<2x32xf32>
    %16 = arith.mulf %14, %15 : vector<2x32xf32>
    %c0_15 = arith.constant 0 : index
    %c0_16 = arith.constant 0 : index
    %17 = vector.load %arg5[%c0_15, %c0_16] : memref<32x3xf32, #tpu.memory_space<vmem>>, vector<32x3xf32>
    %cst_17 = arith.constant dense<0.000000e+00> : vector<2x3xf32>
    %18 = tpu.matmul %16, %17, %cst_17 {dimension_numbers = #tpu.dot_dimension_numbers<[1], [0], [0], [1], [0, 0, 1, 1], [], []>} : vector<2x32xf32>, vector<32x3xf32>, vector<2x3xf32> -> vector<2x3xf32>
    %c0_18 = arith.constant 0 : index
    %c0_19 = arith.constant 0 : index
    %19 = vector.load %arg6[%c0_18, %c0_19] : memref<1x3xf32, #tpu.memory_space<vmem>>, vector<1x3xf32>
    %20 = vector.broadcast %19 : vector<1x3xf32> to vector<2x3xf32>
    %21 = arith.addf %18, %20 : vector<2x3xf32>
    %c0_20 = arith.constant 0 : index
    %c0_21 = arith.constant 0 : index
    %22 = vector.load %arg11[%c0_20, %c0_21] : memref<2x3xf32, #tpu.memory_space<vmem>>, vector<2x3xf32>
    tpu.vector_store %arg11[%c0_20, %c0_21], %21 {strides = array<i32>} : memref<2x3xf32, #tpu.memory_space<vmem>>, vector<2x3xf32>,
    %23 = vector.extract_strided_slice %12 {offsets = [0, 0], sizes = [128, 1], strides = [1, 1]} : vector<128x4xf32> to vector<128x1xf32>
    %c0_22 = arith.constant 0 : index
    %c0_23 = arith.constant 0 : index
    %c0_24 = arith.constant 0 : index
    %24 = vector.load %arg7[%c0_22, %c0_23, %c0_24] : memref<4x128x24xf32, #tpu.memory_space<vmem>>, vector<1x128x24xf32>
    %25 = vector.shape_cast %24 : vector<1x128x24xf32> to vector<128x24xf32>
    %26 = vector.broadcast %23 : vector<128x1xf32> to vector<128x24xf32>
    %27 = arith.mulf %26, %25 : vector<128x24xf32>
    %28 = vector.extract_strided_slice %12 {offsets = [0, 1], sizes = [128, 1], strides = [1, 1]} : vector<128x4xf32> to vector<128x1xf32>
    %c1 = arith.constant 1 : index
    %c0_25 = arith.constant 0 : index
    %c0_26 = arith.constant 0 : index
    %29 = vector.load %arg7[%c1, %c0_25, %c0_26] : memref<4x128x24xf32, #tpu.memory_space<vmem>>, vector<1x128x24xf32>
    %30 = vector.shape_cast %29 : vector<1x128x24xf32> to vector<128x24xf32>
    %31 = vector.broadcast %28 : vector<128x1xf32> to vector<128x24xf32>
    %32 = arith.mulf %31, %30 : vector<128x24xf32>
    %33 = arith.addf %27, %32 : vector<128x24xf32>
    %34 = vector.extract_strided_slice %12 {offsets = [0, 2], sizes = [128, 1], strides = [1, 1]} : vector<128x4xf32> to vector<128x1xf32>
    %c2 = arith.constant 2 : index
    %c0_27 = arith.constant 0 : index
    %c0_28 = arith.constant 0 : index
    %35 = vector.load %arg7[%c2, %c0_27, %c0_28] : memref<4x128x24xf32, #tpu.memory_space<vmem>>, vector<1x128x24xf32>
    %36 = vector.shape_cast %35 : vector<1x128x24xf32> to vector<128x24xf32>
    %37 = vector.broadcast %34 : vector<128x1xf32> to vector<128x24xf32>
    %38 = arith.mulf %37, %36 : vector<128x24xf32>
    %39 = arith.addf %33, %38 : vector<128x24xf32>
    %40 = vector.extract_strided_slice %12 {offsets = [0, 3], sizes = [128, 1], strides = [1, 1]} : vector<128x4xf32> to vector<128x1xf32>
    %c3 = arith.constant 3 : index
    %c0_29 = arith.constant 0 : index
    %c0_30 = arith.constant 0 : index
    %41 = vector.load %arg7[%c3, %c0_29, %c0_30] : memref<4x128x24xf32, #tpu.memory_space<vmem>>, vector<1x128x24xf32>
    %42 = vector.shape_cast %41 : vector<1x128x24xf32> to vector<128x24xf32>
    %43 = vector.broadcast %40 : vector<128x1xf32> to vector<128x24xf32>
    %44 = arith.mulf %43, %42 : vector<128x24xf32>
    %45 = arith.addf %39, %44 : vector<128x24xf32>
    %cst_31 = arith.constant dense<0.000000e+00> : vector<2x24xf32>
    %46 = tpu.matmul %13, %45, %cst_31 {dimension_numbers = #tpu.dot_dimension_numbers<[1], [0], [0], [1], [0, 0, 1, 1], [], []>} : vector<2x128xf32>, vector<128x24xf32>, vector<2x24xf32> -> vector<2x24xf32>
    %c0_32 = arith.constant 0 : index
    %c0_33 = arith.constant 0 : index
    %47 = vector.load %arg8[%c0_32, %c0_33] : memref<1x24xf32, #tpu.memory_space<vmem>>, vector<1x24xf32>
    %48 = vector.broadcast %47 : vector<1x24xf32> to vector<2x24xf32>
    %49 = arith.addf %46, %48 : vector<2x24xf32>
    %c0_34 = arith.constant 0 : index
    %c0_35 = arith.constant 0 : index
    %50 = vector.load %arg10[%c0_34, %c0_35] : memref<2x24xf32, #tpu.memory_space<vmem>>, vector<2x24xf32>
    tpu.vector_store %arg10[%c0_34, %c0_35], %49 {strides = array<i32>} : memref<2x24xf32, #tpu.memory_space<vmem>>, vector<2x24xf32>,
    return
  }
}

</mosaic_0001>

<bundles_post_ra>
// kernel: cdpn_forward.2
= control target key start
LH: loop header
LB: loop body
LE: loop exit
PB: predicated region body
PF: predicated region fallthrough
CT: control target
= control target key end

     0   :  { %s1057_s12 = smov 0   ;;  %s1467_s0 = inlined_call_operand.vmem [shape: f32[960,256], index: 0, kind: input, shape index: {}]   ;;  %s1468_s1 = inlined_call_operand.vmem [shape: bf16[256,3], index: 1, kind: input, shape index: {}]   ;;  %s1469_s2 = inlined_call_operand.vmem [shape: f32[1,3], index: 2, kind: input, shape index: {}]   ;;  %s1470_s3 = inlined_call_operand.vmem [shape: f32[960,3], index: 3, kind: output, shape index: {}]  }
   0x1 LB: > { %s943_s13 = sadd.s32 4294967295, %s1034_s12   ;;  %p947_p0 = scmp.ge.s32.totalorder %s1034_s12, 1  ;;  %s1034_s12 = sphi %s1057_s12, %s13_s12  }
   0x2   : > { %p139_p1 = scmp.lt.s32.totalorder %s1034_s12, 3 }
   0x4   : > { %p140_p2 = pnand %p947_p0, %p139_p1 }
   0x5   : > { %s164_s16 = smul.u32 (!%p140_p2), 60, %s943_s13 }
   0x6   : > { %143 = sbr.rel (%p140_p2) target bundleno = 390 (0x186), region = 32 }
   0x7   : > { %p165_p3 = scmp.lt.s32.totalorder (!%p140_p2), %s164_s16, 119 }
   0xb   : > { %v1012_v0 = vld [vmem:[%s1468_s1 + $0x38] sm:$0xff]   ;;  %v1036_v1 = vmov 0   ;;  %v1013_v2 = vld [vmem:[%s1468_s1 + $0x30] sm:$0xff]   ;;  %v1014_v3 = vld [vmem:[%s1468_s1 + $0x28] sm:$0xff]   ;;  %s1472_s16 = smov (!%p165_p3, %s164_s16), 119  ;;  %vm826_vm0 = vcmask 23552  }
   0xc   : > { %493 = vmatprep.subr.bf16.mxu0 %v1036_v1  ;;  %971 = vmatprep.subr.bf16.mxu1 %v1036_v1  ;;  %v1015_v4 = vld [vmem:[%s1468_s1 + $0x20] sm:$0xff]   ;;  %s970_s23 = sshll.u32 %s1472_s16, 4  ;;  %v1016_v5 = vld [vmem:[%s1468_s1 + $0x18] sm:$0xff]   ;;  %v1017_v11 = vld [vmem:[%s1468_s1 + $0x10] sm:$0xff]   ;;  %s950_s29 = sshll.u32 %s1472_s16, 3 }
   0xd   : > { %494 = vmatpush1.bf16.msra.mxu0 %v1012_v0  ;;  %987 = vmatpush1.bf16.msra.mxu1 %v1012_v0  ;;  %s1091_s26 = scalar_lea.vmem %s1467_s0, %s970_s23  ;;  %v1018_v13 = vld [vmem:[%s1468_s1 + $0x8] sm:$0xff]   ;;  %v1019_v14 = vld [vmem:[%s1468_s1] sm:$0xff]   ;;  %v1020_v15 = vld [vmem:[%s1468_s1 + $0x78] sm:$0xff]  }
   0xe   : > { %495 = vmatprep.subr.bf16.mxu0 %v1036_v1  ;;  %972 = vmatprep.subr.bf16.mxu1 %v1036_v1  ;;  %v179_v6 = vld [vmem:[%s1091_s26 + $0x8] sm:$0xff]  ;;  %v181_v7 = vld [vmem:[%s1091_s26 + $0x18] sm:$0xff]  ;;  %v1021_v16 = vld [vmem:[%s1468_s1 + $0x70] sm:$0xff]  }
   0xf   : > { %v239_v8 = vld [vmem:[%s1091_s26 + $0x1e8] sm:$0xff]  ;;  %v299_v9 = vpack.c.bf16 %v181_v7, %v179_v6  ;;  %v241_v10 = vld [vmem:[%s1091_s26 + $0x1f8] sm:$0xff]  ;;  %v1023_v18 = vld [vmem:[%s1468_s1 + $0x60] sm:$0xff]  }
  0x10   : > { %v329_v12 = vpack.c.bf16 %v241_v10, %v239_v8  ;;  %v1022_v17 = vld [vmem:[%s1468_s1 + $0x68] sm:$0xff]   ;;  %v1024_v19 = vld [vmem:[%s1468_s1 + $0x58] sm:$0xff]   ;;  %v1025_v20 = vld [vmem:[%s1468_s1 + $0x50] sm:$0xff]  }
  0x11   : > { %496 = vmatpush1.bf16.msra.mxu0 %v1013_v2  ;;  %988 = vmatpush1.bf16.msra.mxu1 %v1013_v2  ;;  %v1026_v21 = vld [vmem:[%s1468_s1 + $0x48] sm:$0xff]   ;;  %v1027_v22 = vld [vmem:[%s1468_s1 + $0x40] sm:$0xff]   ;;  %v180_v24 = vld [vmem:[%s1091_s26 + $0x10] sm:$0xff] }
  0x12   : > { %497 = vmatprep.subr.bf16.mxu0 %v1036_v1  ;;  %973 = vmatprep.subr.bf16.mxu1 %v1036_v1  ;;  %v178_v23 = vld [vmem:[%s1091_s26] sm:$0xff]  ;;  %v240_v26 = vld [vmem:[%s1091_s26 + $0x1f0] sm:$0xff]  ;;  %v183_v27 = vld [vmem:[%s1091_s26 + $0x28] sm:$0xff] }
  0x13   : > { %525 = vmatprep.mubr.bf16.mxu0 %v299_v9  ;;  %645 = vmatprep.mubr.bf16.mxu1 %v329_v12  ;;  %v238_v25 = vld [vmem:[%s1091_s26 + $0x1e0] sm:$0xff]  ;;  %v185_v28 = vld [vmem:[%s1091_s26 + $0x38] sm:$0xff]  ;;  %v243_v29 = vld [vmem:[%s1091_s26 + $0x208] sm:$0xff]  ;;  %v298_v31 = vpack.c.bf16 %v180_v24, %v178_v23 }
  0x14   : > { %v245_v30 = vld [vmem:[%s1091_s26 + $0x218] sm:$0xff]  ;;  %v328_v32 = vpack.c.bf16 %v240_v26, %v238_v25  ;;  %v301_v33 = vpack.c.bf16 %v185_v28, %v183_v27  ;;  %v182_v35 = vld [vmem:[%s1091_s26 + $0x20] sm:$0xff]  ;;  %v184_v36 = vld [vmem:[%s1091_s26 + $0x30] sm:$0xff] }
  0x15   : > { %498 = vmatpush1.bf16.msra.mxu0 %v1014_v3  ;;  %989 = vmatpush1.bf16.msra.mxu1 %v1014_v3  ;;  %v331_v34 = vpack.c.bf16 %v245_v30, %v243_v29  ;;  %v242_v37 = vld [vmem:[%s1091_s26 + $0x200] sm:$0xff]  ;;  %v244_v38 = vld [vmem:[%s1091_s26 + $0x210] sm:$0xff]  ;;  %v187_v39 = vld [vmem:[%s1091_s26 + $0x48] sm:$0xff]  ;;  %v300_v43 = vpack.c.bf16 %v184_v36, %v182_v35 }
  0x16   : > { %499 = vmatprep.subr.bf16.mxu0 %v1036_v1  ;;  %974 = vmatprep.subr.bf16.mxu1 %v1036_v1  ;;  %v189_v40 = vld [vmem:[%s1091_s26 + $0x58] sm:$0xff]  ;;  %v247_v41 = vld [vmem:[%s1091_s26 + $0x228] sm:$0xff]  ;;  %v330_v44 = vpack.c.bf16 %v244_v38, %v242_v37  ;;  %v186_v47 = vld [vmem:[%s1091_s26 + $0x40] sm:$0xff] }
  0x17   : > { %v249_v42 = vld [vmem:[%s1091_s26 + $0x238] sm:$0xff]  ;;  %v303_v45 = vpack.c.bf16 %v189_v40, %v187_v39  ;;  %v188_v48 = vld [vmem:[%s1091_s26 + $0x50] sm:$0xff]  ;;  %v246_v49 = vld [vmem:[%s1091_s26 + $0x220] sm:$0xff] }
  0x18   : > { %v333_v46 = vpack.c.bf16 %v249_v42, %v247_v41  ;;  %v248_v50 = vld [vmem:[%s1091_s26 + $0x230] sm:$0xff]  ;;  %v191_v51 = vld [vmem:[%s1091_s26 + $0x68] sm:$0xff]  ;;  %v193_v52 = vld [vmem:[%s1091_s26 + $0x78] sm:$0xff]  ;;  %v302_v55 = vpack.c.bf16 %v188_v48, %v186_v47 }
  0x19   : > { %500 = vmatpush1.bf16.msra.mxu0 %v1015_v4  ;;  %990 = vmatpush1.bf16.msra.mxu1 %v1015_v4  ;;  %v251_v53 = vld [vmem:[%s1091_s26 + $0x248] sm:$0xff]  ;;  %v253_v54 = vld [vmem:[%s1091_s26 + $0x258] sm:$0xff]  ;;  %v332_v56 = vpack.c.bf16 %v248_v50, %v246_v49  ;;  %v305_v57 = vpack.c.bf16 %v193_v52, %v191_v51  ;;  %v190_v59 = vld [vmem:[%s1091_s26 + $0x60] sm:$0xff] }
  0x1a   : > { %501 = vmatprep.subr.bf16.mxu0 %v1036_v1  ;;  %975 = vmatprep.subr.bf16.mxu1 %v1036_v1  ;;  %v335_v58 = vpack.c.bf16 %v253_v54, %v251_v53  ;;  %v192_v60 = vld [vmem:[%s1091_s26 + $0x70] sm:$0xff]  ;;  %v250_v61 = vld [vmem:[%s1091_s26 + $0x240] sm:$0xff]  ;;  %v195_v63 = vld [vmem:[%s1091_s26 + $0x88] sm:$0xff] }
  0x1b   : > { %v252_v62 = vld [vmem:[%s1091_s26 + $0x250] sm:$0xff]  ;;  %v197_v0 = vld [vmem:[%s1091_s26 + $0x98] sm:$0xff]  ;;  %v304_v3 = vpack.c.bf16 %v192_v60, %v190_v59  ;;  %v194_v7 = vld [vmem:[%s1091_s26 + $0x80] sm:$0xff] }
  0x1c   : > { %v257_v2 = vld [vmem:[%s1091_s26 + $0x278] sm:$0xff]  ;;  %v334_v4 = vpack.c.bf16 %v252_v62, %v250_v61  ;;  %v196_v8 = vld [vmem:[%s1091_s26 + $0x90] sm:$0xff]  ;;  %v254_v9 = vld [vmem:[%s1091_s26 + $0x260] sm:$0xff] }
  0x1d   : > { %502 = vmatpush1.bf16.msra.mxu0 %v1016_v5  ;;  %991 = vmatpush1.bf16.msra.mxu1 %v1016_v5  ;;  %v307_v5 = vpack.c.bf16 %v197_v0, %v195_v63  ;;  %v256_v10 = vld [vmem:[%s1091_s26 + $0x270] sm:$0xff]  ;;  %v201_v12 = vld [vmem:[%s1091_s26 + $0xb8] sm:$0xff]  ;;  %v203_v23 = vld [vmem:[%s1091_s26 + $0xc8] sm:$0xff] }
  0x1e   : > { %503 = vmatprep.subr.bf16.mxu0 %v1036_v1  ;;  %976 = vmatprep.subr.bf16.mxu1 %v1036_v1  ;;  %v205_v24 = vld [vmem:[%s1091_s26 + $0xd8] sm:$0xff]  ;;  %v263_v25 = vld [vmem:[%s1091_s26 + $0x2a8] sm:$0xff] }
  0x1f   : > { %v265_v26 = vld [vmem:[%s1091_s26 + $0x2b8] sm:$0xff]  ;;  %v311_v29 = vpack.c.bf16 %v205_v24, %v203_v23  ;;  %v207_v35 = vld [vmem:[%s1091_s26 + $0xe8] sm:$0xff] }
  0x20   : > { %v341_v30 = vpack.c.bf16 %v265_v26, %v263_v25  ;;  %v209_v36 = vld [vmem:[%s1091_s26 + $0xf8] sm:$0xff]  ;;  %v267_v37 = vld [vmem:[%s1091_s26 + $0x2c8] sm:$0xff] }
  0x21   : > { %504 = vmatpush1.bf16.msra.mxu0 %v1017_v11  ;;  %992 = vmatpush1.bf16.msra.mxu1 %v1017_v11  ;;  %v199_v11 = vld [vmem:[%s1091_s26 + $0xa8] sm:$0xff]  ;;  %v269_v38 = vld [vmem:[%s1091_s26 + $0x2d8] sm:$0xff]  ;;  %v313_v41 = vpack.c.bf16 %v209_v36, %v207_v35 }
  0x22   : > { %505 = vmatprep.subr.bf16.mxu0 %v1036_v1  ;;  %977 = vmatprep.subr.bf16.mxu1 %v1036_v1  ;;  %v343_v42 = vpack.c.bf16 %v269_v38, %v267_v37  ;;  %v211_v47 = vld [vmem:[%s1091_s26 + $0x108] sm:$0xff]  ;;  %v213_v48 = vld [vmem:[%s1091_s26 + $0x118] sm:$0xff] }
  0x23   : > { %v271_v49 = vld [vmem:[%s1091_s26 + $0x2e8] sm:$0xff]  ;;  %v273_v50 = vld [vmem:[%s1091_s26 + $0x2f8] sm:$0xff]  ;;  %v315_v53 = vpack.c.bf16 %v213_v48, %v211_v47 }
  0x24   : > { %v345_v54 = vpack.c.bf16 %v273_v50, %v271_v49  ;;  %v215_v59 = vld [vmem:[%s1091_s26 + $0x128] sm:$0xff]  ;;  %v217_v60 = vld [vmem:[%s1091_s26 + $0x138] sm:$0xff] }
  0x25   : > { %506 = vmatpush1.bf16.msra.mxu0 %v1018_v13  ;;  %993 = vmatpush1.bf16.msra.mxu1 %v1018_v13  ;;  %v259_v13 = vld [vmem:[%s1091_s26 + $0x288] sm:$0xff]  ;;  %v277_v62 = vld [vmem:[%s1091_s26 + $0x318] sm:$0xff] }
  0x26   : > { %507 = vmatprep.subr.bf16.mxu0 %v1036_v1  ;;  %978 = vmatprep.subr.bf16.mxu1 %v1036_v1  ;;  %v275_v61 = vld [vmem:[%s1091_s26 + $0x308] sm:$0xff] }
  0x29   : > { %508 = vmatpush1.bf16.msra.mxu0 %v1019_v14  ;;  %994 = vmatpush1.bf16.msra.mxu1 %v1019_v14  ;;  %v261_v14 = vld [vmem:[%s1091_s26 + $0x298] sm:$0xff] }
  0x2a   : > { %509 = vmatprep.subr.bf16.mxu0 %v1036_v1  ;;  %979 = vmatprep.subr.bf16.mxu1 %v1036_v1 }
  0x2d   : > { %510 = vmatpush2.bf16.msra.mxu0 %v1020_v15  ;;  %995 = vmatpush2.bf16.msra.mxu1 %v1020_v15  ;;  %v306_v15 = vpack.c.bf16 %v196_v8, %v194_v7  ;;  %v219_v7 = vld [vmem:[%s1091_s26 + $0x148] sm:$0xff]  ;;  %v221_v8 = vld [vmem:[%s1091_s26 + $0x158] sm:$0xff] }
  0x2e   : > { %511 = vmatprep.subr.bf16.mxu0 %v1036_v1  ;;  %980 = vmatprep.subr.bf16.mxu1 %v1036_v1 }
  0x31   : > { %512 = vmatpush2.bf16.msra.mxu0 %v1021_v16  ;;  %996 = vmatpush2.bf16.msra.mxu1 %v1021_v16  ;;  %v336_v16 = vpack.c.bf16 %v256_v10, %v254_v9  ;;  %v279_v9 = vld [vmem:[%s1091_s26 + $0x328] sm:$0xff]  ;;  %v281_v10 = vld [vmem:[%s1091_s26 + $0x338] sm:$0xff] }
  0x32   : > { %513 = vmatprep.subr.bf16.mxu0 %v1036_v1  ;;  %981 = vmatprep.subr.bf16.mxu1 %v1036_v1 }
  0x35   : > { %514 = vmatpush2.bf16.msra.mxu0 %v1022_v17  ;;  %997 = vmatpush2.bf16.msra.mxu1 %v1022_v17  ;;  %v309_v17 = vpack.c.bf16 %v201_v12, %v199_v11 }
  0x36   : > { %515 = vmatprep.subr.bf16.mxu0 %v1036_v1  ;;  %982 = vmatprep.subr.bf16.mxu1 %v1036_v1 }
  0x39   : > { %516 = vmatpush2.bf16.msra.mxu0 %v1023_v18  ;;  %998 = vmatpush2.bf16.msra.mxu1 %v1023_v18  ;;  %v339_v18 = vpack.c.bf16 %v261_v14, %v259_v13  ;;  %v319_v13 = vpack.c.bf16 %v221_v8, %v219_v7  ;;  %v349_v14 = vpack.c.bf16 %v281_v10, %v279_v9 }
  0x3a   : > { %517 = vmatprep.subr.bf16.mxu0 %v1036_v1  ;;  %983 = vmatprep.subr.bf16.mxu1 %v1036_v1 }
  0x3d   : > { %518 = vmatpush2.bf16.msra.mxu0 %v1024_v19  ;;  %999 = vmatpush2.bf16.msra.mxu1 %v1024_v19  ;;  %v198_v19 = vld [vmem:[%s1091_s26 + $0xa0] sm:$0xff] }
  0x3e   : > { %519 = vmatprep.subr.bf16.mxu0 %v1036_v1  ;;  %984 = vmatprep.subr.bf16.mxu1 %v1036_v1 }
  0x41   : > { %520 = vmatpush2.bf16.msra.mxu0 %v1025_v20  ;;  %1000 = vmatpush2.bf16.msra.mxu1 %v1025_v20  ;;  %v200_v20 = vld [vmem:[%s1091_s26 + $0xb0] sm:$0xff] }
  0x42   : > { %521 = vmatprep.subr.bf16.mxu0 %v1036_v1  ;;  %985 = vmatprep.subr.bf16.mxu1 %v1036_v1  ;;  %v308_v27 = vpack.c.bf16 %v200_v20, %v198_v19  ;;  %v223_v19 = vld [vmem:[%s1091_s26 + $0x168] sm:$0xff]  ;;  %v225_v20 = vld [vmem:[%s1091_s26 + $0x178] sm:$0xff] }
  0x43   : > { %v321_v25 = vpack.c.bf16 %v225_v20, %v223_v19 }
  0x45   : > { %522 = vmatpush2.bf16.msra.mxu0 %v1026_v21  ;;  %1001 = vmatpush2.bf16.msra.mxu1 %v1026_v21  ;;  %v258_v21 = vld [vmem:[%s1091_s26 + $0x280] sm:$0xff] }
  0x46   : > { %523 = vmatprep.subr.bf16.mxu0 %v1036_v1  ;;  %986 = vmatprep.subr.bf16.mxu1 %v1036_v1  ;;  %v255_v1 = vld [vmem:[%s1091_s26 + $0x268] sm:$0xff] }
  0x47   : > { %v337_v6 = vpack.c.bf16 %v257_v2, %v255_v1  ;;  %v317_v1 = vpack.c.bf16 %v217_v60, %v215_v59  ;;  %v347_v2 = vpack.c.bf16 %v277_v62, %v275_v61 }
  0x49   : > { %524 = vmatpush2.bf16.msra.mxu0 %v1027_v22  ;;  %1002 = vmatpush2.bf16.msra.mxu1 %v1027_v22  ;;  %v260_v22 = vld [vmem:[%s1091_s26 + $0x290] sm:$0xff] }
  0x4a   : > { %v338_v28 = vpack.c.bf16 %v260_v22, %v258_v21  ;;  %v283_v21 = vld [vmem:[%s1091_s26 + $0x348] sm:$0xff]  ;;  %v285_v22 = vld [vmem:[%s1091_s26 + $0x358] sm:$0xff] }
  0x4b   : > { %v351_v26 = vpack.c.bf16 %v285_v22, %v283_v21 }
  0x4c   : > { %526 = vmatmul.mubr.bf16.vlgmr.msra.gmra.mxu0 %v298_v31  ;;  %646 = vmatmul.mubr.bf16.vlgmr.msra.gmra.mxu1 %v328_v32  ;;  %v202_v31 = vld [vmem:[%s1091_s26 + $0xc0] sm:$0xff]  ;;  %v204_v32 = vld [vmem:[%s1091_s26 + $0xd0] sm:$0xff] }
  0x4d   : > { %533 = vmatprep.mubr.bf16.mxu0 %v301_v33  ;;  %653 = vmatprep.mubr.bf16.mxu1 %v331_v34  ;;  %v262_v33 = vld [vmem:[%s1091_s26 + $0x2a0] sm:$0xff]  ;;  %v264_v34 = vld [vmem:[%s1091_s26 + $0x2b0] sm:$0xff]  ;;  %v310_v39 = vpack.c.bf16 %v204_v32, %v202_v31  ;;  %v227_v31 = vld [vmem:[%s1091_s26 + $0x188] sm:$0xff] }
  0x4e   : > { %v340_v40 = vpack.c.bf16 %v264_v34, %v262_v33  ;;  %v229_v32 = vld [vmem:[%s1091_s26 + $0x198] sm:$0xff]  ;;  %v287_v33 = vld [vmem:[%s1091_s26 + $0x368] sm:$0xff] }
  0x4f   : > { %v289_v34 = vld [vmem:[%s1091_s26 + $0x378] sm:$0xff]  ;;  %v323_v37 = vpack.c.bf16 %v229_v32, %v227_v31 }
  0x50   : > { %v353_v38 = vpack.c.bf16 %v289_v34, %v287_v33 }
  0x54   : > { %534 = vmatmul.mubr.bf16.gmra.mxu0 %v300_v43  ;;  %654 = vmatmul.mubr.bf16.gmra.mxu1 %v330_v44  ;;  %v206_v43 = vld [vmem:[%s1091_s26 + $0xe0] sm:$0xff]  ;;  %v208_v44 = vld [vmem:[%s1091_s26 + $0xf0] sm:$0xff] }
  0x55   : > { %541 = vmatprep.mubr.bf16.mxu0 %v303_v45  ;;  %661 = vmatprep.mubr.bf16.mxu1 %v333_v46  ;;  %v266_v45 = vld [vmem:[%s1091_s26 + $0x2c0] sm:$0xff]  ;;  %v268_v46 = vld [vmem:[%s1091_s26 + $0x2d0] sm:$0xff]  ;;  %v312_v51 = vpack.c.bf16 %v208_v44, %v206_v43  ;;  %v231_v43 = vld [vmem:[%s1091_s26 + $0x1a8] sm:$0xff] }
  0x56   : > { %v342_v52 = vpack.c.bf16 %v268_v46, %v266_v45  ;;  %v233_v44 = vld [vmem:[%s1091_s26 + $0x1b8] sm:$0xff]  ;;  %v291_v45 = vld [vmem:[%s1091_s26 + $0x388] sm:$0xff] }
  0x57   : > { %v293_v46 = vld [vmem:[%s1091_s26 + $0x398] sm:$0xff]  ;;  %v325_v49 = vpack.c.bf16 %v233_v44, %v231_v43 }
  0x58   : > { %v355_v50 = vpack.c.bf16 %v293_v46, %v291_v45 }
  0x5c   : > { %542 = vmatmul.mubr.bf16.gmra.mxu0 %v302_v55  ;;  %662 = vmatmul.mubr.bf16.gmra.mxu1 %v332_v56  ;;  %v210_v55 = vld [vmem:[%s1091_s26 + $0x100] sm:$0xff]  ;;  %v212_v56 = vld [vmem:[%s1091_s26 + $0x110] sm:$0xff] }
  0x5d   : > { %549 = vmatprep.mubr.bf16.mxu0 %v305_v57  ;;  %669 = vmatprep.mubr.bf16.mxu1 %v335_v58  ;;  %v270_v57 = vld [vmem:[%s1091_s26 + $0x2e0] sm:$0xff]  ;;  %v272_v58 = vld [vmem:[%s1091_s26 + $0x2f0] sm:$0xff]  ;;  %v314_v63 = vpack.c.bf16 %v212_v56, %v210_v55  ;;  %v235_v55 = vld [vmem:[%s1091_s26 + $0x1c8] sm:$0xff] }
  0x5e   : > { %v344_v0 = vpack.c.bf16 %v272_v58, %v270_v57  ;;  %v237_v56 = vld [vmem:[%s1091_s26 + $0x1d8] sm:$0xff]  ;;  %v295_v57 = vld [vmem:[%s1091_s26 + $0x3a8] sm:$0xff] }
  0x5f   : > { %v297_v58 = vld [vmem:[%s1091_s26 + $0x3b8] sm:$0xff]  ;;  %v327_v61 = vpack.c.bf16 %v237_v56, %v235_v55 }
  0x60   : > { %v357_v62 = vpack.c.bf16 %v297_v58, %v295_v57 }
  0x64   : > { %550 = vmatmul.mubr.bf16.gmra.mxu0 %v304_v3  ;;  %670 = vmatmul.mubr.bf16.gmra.mxu1 %v334_v4  ;;  %v214_v3 = vld [vmem:[%s1091_s26 + $0x120] sm:$0xff]  ;;  %v216_v4 = vld [vmem:[%s1091_s26 + $0x130] sm:$0xff] }
  0x65   : > { %557 = vmatprep.mubr.bf16.mxu0 %v307_v5  ;;  %677 = vmatprep.mubr.bf16.mxu1 %v337_v6  ;;  %v274_v5 = vld [vmem:[%s1091_s26 + $0x300] sm:$0xff]  ;;  %v276_v6 = vld [vmem:[%s1091_s26 + $0x310] sm:$0xff]  ;;  %v316_v11 = vpack.c.bf16 %v216_v4, %v214_v3 }
  0x66   : > { %v346_v12 = vpack.c.bf16 %v276_v6, %v274_v5  ;;  %v1276_v5 = vld [vmem:[%s1469_s2] ss:$0 sm:$0xff] }
  0x6c   : > { %558 = vmatmul.mubr.bf16.gmra.mxu0 %v306_v15  ;;  %678 = vmatmul.mubr.bf16.gmra.mxu1 %v336_v16  ;;  %v218_v15 = vld [vmem:[%s1091_s26 + $0x140] sm:$0xff]  ;;  %v220_v16 = vld [vmem:[%s1091_s26 + $0x150] sm:$0xff] }
  0x6d   : > { %565 = vmatprep.mubr.bf16.mxu0 %v309_v17  ;;  %685 = vmatprep.mubr.bf16.mxu1 %v339_v18  ;;  %v278_v17 = vld [vmem:[%s1091_s26 + $0x320] sm:$0xff]  ;;  %v280_v18 = vld [vmem:[%s1091_s26 + $0x330] sm:$0xff]  ;;  %v318_v23 = vpack.c.bf16 %v220_v16, %v218_v15 }
  0x6e   : > { %v348_v24 = vpack.c.bf16 %v280_v18, %v278_v17 }
  0x74   : > { %566 = vmatmul.mubr.bf16.gmra.mxu0 %v308_v27  ;;  %686 = vmatmul.mubr.bf16.gmra.mxu1 %v338_v28  ;;  %v222_v27 = vld [vmem:[%s1091_s26 + $0x160] sm:$0xff]  ;;  %v224_v28 = vld [vmem:[%s1091_s26 + $0x170] sm:$0xff] }
  0x75   : > { %573 = vmatprep.mubr.bf16.mxu0 %v311_v29  ;;  %693 = vmatprep.mubr.bf16.mxu1 %v341_v30  ;;  %v282_v29 = vld [vmem:[%s1091_s26 + $0x340] sm:$0xff]  ;;  %v284_v30 = vld [vmem:[%s1091_s26 + $0x350] sm:$0xff]  ;;  %v320_v35 = vpack.c.bf16 %v224_v28, %v222_v27 }
  0x76   : > { %v350_v36 = vpack.c.bf16 %v284_v30, %v282_v29 }
  0x7c   : > { %574 = vmatmul.mubr.bf16.gmra.mxu0 %v310_v39  ;;  %694 = vmatmul.mubr.bf16.gmra.mxu1 %v340_v40  ;;  %v226_v39 = vld [vmem:[%s1091_s26 + $0x180] sm:$0xff]  ;;  %v228_v40 = vld [vmem:[%s1091_s26 + $0x190] sm:$0xff] }
  0x7d   : > { %581 = vmatprep.mubr.bf16.mxu0 %v313_v41  ;;  %701 = vmatprep.mubr.bf16.mxu1 %v343_v42  ;;  %v286_v41 = vld [vmem:[%s1091_s26 + $0x360] sm:$0xff]  ;;  %v288_v42 = vld [vmem:[%s1091_s26 + $0x370] sm:$0xff]  ;;  %v322_v47 = vpack.c.bf16 %v228_v40, %v226_v39 }
  0x7e   : > { %v352_v48 = vpack.c.bf16 %v288_v42, %v286_v41 }
  0x84   : > { %582 = vmatmul.mubr.bf16.gmra.mxu0 %v312_v51  ;;  %702 = vmatmul.mubr.bf16.gmra.mxu1 %v342_v52  ;;  %v230_v51 = vld [vmem:[%s1091_s26 + $0x1a0] sm:$0xff]  ;;  %v232_v52 = vld [vmem:[%s1091_s26 + $0x1b0] sm:$0xff] }
  0x85   : > { %589 = vmatprep.mubr.bf16.mxu0 %v315_v53  ;;  %709 = vmatprep.mubr.bf16.mxu1 %v345_v54  ;;  %v290_v53 = vld [vmem:[%s1091_s26 + $0x380] sm:$0xff]  ;;  %v292_v54 = vld [vmem:[%s1091_s26 + $0x390] sm:$0xff]  ;;  %v324_v59 = vpack.c.bf16 %v232_v52, %v230_v51 }
  0x86   : > { %v354_v60 = vpack.c.bf16 %v292_v54, %v290_v53 }
  0x8c   : > { %590 = vmatmul.mubr.bf16.gmra.mxu0 %v314_v63  ;;  %710 = vmatmul.mubr.bf16.gmra.mxu1 %v344_v0  ;;  %v234_v63 = vld [vmem:[%s1091_s26 + $0x1c0] sm:$0xff]  ;;  %v236_v0 = vld [vmem:[%s1091_s26 + $0x1d0] sm:$0xff] }
  0x8d   : > { %597 = vmatprep.mubr.bf16.mxu0 %v317_v1  ;;  %717 = vmatprep.mubr.bf16.mxu1 %v347_v2  ;;  %v294_v1 = vld [vmem:[%s1091_s26 + $0x3a0] sm:$0xff]  ;;  %v296_v2 = vld [vmem:[%s1091_s26 + $0x3b0] sm:$0xff]  ;;  %v326_v3 = vpack.c.bf16 %v236_v0, %v234_v63  ;;  %s1284_s26 = scalar_lea.vmem %s1470_s3, %s950_s29 }
  0x8e   : > { %v356_v4 = vpack.c.bf16 %v296_v2, %v294_v1 }
  0x94   : > { %598 = vmatmul.mubr.bf16.gmra.mxu0 %v316_v11  ;;  %718 = vmatmul.mubr.bf16.gmra.mxu1 %v346_v12 }
  0x95   : > { %605 = vmatprep.mubr.bf16.mxu0 %v319_v13  ;;  %725 = vmatprep.mubr.bf16.mxu1 %v349_v14 }
  0x9c   : > { %606 = vmatmul.mubr.bf16.gmra.mxu0 %v318_v23  ;;  %726 = vmatmul.mubr.bf16.gmra.mxu1 %v348_v24 }
  0x9d   : > { %613 = vmatprep.mubr.bf16.mxu0 %v321_v25  ;;  %733 = vmatprep.mubr.bf16.mxu1 %v351_v26 }
  0xa4   : > { %614 = vmatmul.mubr.bf16.gmra.mxu0 %v320_v35  ;;  %734 = vmatmul.mubr.bf16.gmra.mxu1 %v350_v36 }
  0xa5   : > { %621 = vmatprep.mubr.bf16.mxu0 %v323_v37  ;;  %741 = vmatprep.mubr.bf16.mxu1 %v353_v38 }
  0xac   : > { %622 = vmatmul.mubr.bf16.gmra.mxu0 %v322_v47  ;;  %742 = vmatmul.mubr.bf16.gmra.mxu1 %v352_v48 }
  0xad   : > { %629 = vmatprep.mubr.bf16.mxu0 %v325_v49  ;;  %749 = vmatprep.mubr.bf16.mxu1 %v355_v50 }
  0xb4   : > { %630 = vmatmul.mubr.bf16.gmra.mxu0 %v324_v59  ;;  %750 = vmatmul.mubr.bf16.gmra.mxu1 %v354_v60 }
  0xb5   : > { %637 = vmatprep.mubr.bf16.mxu0 %v327_v61  ;;  %757 = vmatprep.mubr.bf16.mxu1 %v357_v62 }
  0xbc   : > { %638 = vmatmul.mubr.bf16.gmra.mxu0 %v326_v3  ;;  %758 = vmatmul.mubr.bf16.gmra.mxu1 %v356_v4 }
 0x10c   : > { %v527_v6 = vpop.f32.mrf.mxu0  ;;  %v647_v7 = vpop.f32.mrf.mxu1 }
 0x10d   : > { %v528_v8 = vadd.f32 %v1276_v5, %v527_v6  ;;  %v648_v9 = vadd.f32 %v1276_v5, %v647_v7 }
 0x10e   : > { %v529_v10 = vpop.f32.mrf.mxu0  ;;  %v649_v11 = vpop.f32.mrf.mxu1 }
 0x10f   : > { %v766_v12 = vmax.f32 %v528_v8, 0.0  ;;  %v796_v13 = vmax.f32 %v648_v9, 0.0 }
 0x110   : > { %v530_v14 = vpop.f32.mrf.mxu0  ;;  %v650_v15 = vpop.f32.mrf.mxu1 }
 0x111   : > { %827 = vst.msk [vmem:[%s1284_s26] sm:$0xff] %vm826_vm0, %v766_v12  ;;  %857 = vst.msk [vmem:[%s1284_s26 + $0xf0] sm:$0xff] %vm826_vm0, %v796_v13  ;;  %v531_v16 = vadd.f32 %v1276_v5, %v530_v14  ;;  %v651_v17 = vadd.f32 %v1276_v5, %v650_v15 }
 0x112   : > { %v532_v18 = vpop.f32.mrf.mxu0  ;;  %v652_v19 = vpop.f32.mrf.mxu1 }
 0x113   : > { %v767_v20 = vmax.f32 %v531_v16, 0.0  ;;  %v797_v21 = vmax.f32 %v651_v17, 0.0 }
 0x114   : > { %v535_v22 = vpop.f32.mrf.mxu0  ;;  %v655_v23 = vpop.f32.mrf.mxu1 }
 0x115   : > { %828 = vst.msk [vmem:[%s1284_s26 + $0x8] sm:$0xff] %vm826_vm0, %v767_v20  ;;  %858 = vst.msk [vmem:[%s1284_s26 + $0xf8] sm:$0xff] %vm826_vm0, %v797_v21  ;;  %v536_v24 = vadd.f32 %v1276_v5, %v535_v22  ;;  %v656_v25 = vadd.f32 %v1276_v5, %v655_v23 }
 0x116   : > { %v537_v26 = vpop.f32.mrf.mxu0  ;;  %v657_v27 = vpop.f32.mrf.mxu1 }
 0x117   : > { %v768_v28 = vmax.f32 %v536_v24, 0.0  ;;  %v798_v29 = vmax.f32 %v656_v25, 0.0 }
 0x118   : > { %v538_v30 = vpop.f32.mrf.mxu0  ;;  %v658_v31 = vpop.f32.mrf.mxu1 }
 0x119   : > { %829 = vst.msk [vmem:[%s1284_s26 + $0x10] sm:$0xff] %vm826_vm0, %v768_v28  ;;  %859 = vst.msk [vmem:[%s1284_s26 + $0x100] sm:$0xff] %vm826_vm0, %v798_v29  ;;  %v539_v32 = vadd.f32 %v1276_v5, %v538_v30  ;;  %v659_v33 = vadd.f32 %v1276_v5, %v658_v31 }
 0x11a   : > { %v540_v34 = vpop.f32.mrf.mxu0  ;;  %v660_v35 = vpop.f32.mrf.mxu1 }
 0x11b   : > { %v769_v36 = vmax.f32 %v539_v32, 0.0  ;;  %v799_v37 = vmax.f32 %v659_v33, 0.0 }
 0x11c   : > { %v543_v38 = vpop.f32.mrf.mxu0  ;;  %v663_v39 = vpop.f32.mrf.mxu1 }
 0x11d   : > { %830 = vst.msk [vmem:[%s1284_s26 + $0x18] sm:$0xff] %vm826_vm0, %v769_v36  ;;  %860 = vst.msk [vmem:[%s1284_s26 + $0x108] sm:$0xff] %vm826_vm0, %v799_v37  ;;  %v544_v40 = vadd.f32 %v1276_v5, %v543_v38  ;;  %v664_v41 = vadd.f32 %v1276_v5, %v663_v39 }
 0x11e   : > { %v545_v42 = vpop.f32.mrf.mxu0  ;;  %v665_v43 = vpop.f32.mrf.mxu1 }
 0x11f   : > { %v770_v44 = vmax.f32 %v544_v40, 0.0  ;;  %v800_v45 = vmax.f32 %v664_v41, 0.0 }
 0x120   : > { %v546_v46 = vpop.f32.mrf.mxu0  ;;  %v666_v47 = vpop.f32.mrf.mxu1 }
 0x121   : > { %831 = vst.msk [vmem:[%s1284_s26 + $0x20] sm:$0xff] %vm826_vm0, %v770_v44  ;;  %861 = vst.msk [vmem:[%s1284_s26 + $0x110] sm:$0xff] %vm826_vm0, %v800_v45  ;;  %v547_v48 = vadd.f32 %v1276_v5, %v546_v46  ;;  %v667_v49 = vadd.f32 %v1276_v5, %v666_v47 }
 0x122   : > { %v548_v50 = vpop.f32.mrf.mxu0  ;;  %v668_v51 = vpop.f32.mrf.mxu1 }
 0x123   : > { %v771_v52 = vmax.f32 %v547_v48, 0.0  ;;  %v801_v53 = vmax.f32 %v667_v49, 0.0 }
 0x124   : > { %v551_v54 = vpop.f32.mrf.mxu0  ;;  %v671_v55 = vpop.f32.mrf.mxu1 }
 0x125   : > { %832 = vst.msk [vmem:[%s1284_s26 + $0x28] sm:$0xff] %vm826_vm0, %v771_v52  ;;  %862 = vst.msk [vmem:[%s1284_s26 + $0x118] sm:$0xff] %vm826_vm0, %v801_v53  ;;  %v552_v56 = vadd.f32 %v1276_v5, %v551_v54  ;;  %v672_v57 = vadd.f32 %v1276_v5, %v671_v55 }
 0x126   : > { %v553_v58 = vpop.f32.mrf.mxu0  ;;  %v673_v59 = vpop.f32.mrf.mxu1 }
 0x127   : > { %v772_v60 = vmax.f32 %v552_v56, 0.0  ;;  %v802_v61 = vmax.f32 %v672_v57, 0.0 }
 0x128   : > { %v554_v62 = vpop.f32.mrf.mxu0  ;;  %v674_v63 = vpop.f32.mrf.mxu1 }
 0x129   : > { %833 = vst.msk [vmem:[%s1284_s26 + $0x30] sm:$0xff] %vm826_vm0, %v772_v60  ;;  %863 = vst.msk [vmem:[%s1284_s26 + $0x120] sm:$0xff] %vm826_vm0, %v802_v61  ;;  %v555_v0 = vadd.f32 %v1276_v5, %v554_v62  ;;  %v675_v1 = vadd.f32 %v1276_v5, %v674_v63 }
 0x12a   : > { %v556_v2 = vpop.f32.mrf.mxu0  ;;  %v676_v3 = vpop.f32.mrf.mxu1 }
 0x12b   : > { %v773_v4 = vmax.f32 %v555_v0, 0.0  ;;  %v803_v6 = vmax.f32 %v675_v1, 0.0 }
 0x12c   : > { %v559_v7 = vpop.f32.mrf.mxu0  ;;  %v679_v8 = vpop.f32.mrf.mxu1 }
 0x12d   : > { %834 = vst.msk [vmem:[%s1284_s26 + $0x38] sm:$0xff] %vm826_vm0, %v773_v4  ;;  %864 = vst.msk [vmem:[%s1284_s26 + $0x128] sm:$0xff] %vm826_vm0, %v803_v6  ;;  %v560_v9 = vadd.f32 %v1276_v5, %v559_v7  ;;  %v680_v10 = vadd.f32 %v1276_v5, %v679_v8 }
 0x12e   : > { %v561_v11 = vpop.f32.mrf.mxu0  ;;  %v681_v12 = vpop.f32.mrf.mxu1 }
 0x12f   : > { %v774_v13 = vmax.f32 %v560_v9, 0.0  ;;  %v804_v14 = vmax.f32 %v680_v10, 0.0 }
 0x130   : > { %v562_v15 = vpop.f32.mrf.mxu0  ;;  %v682_v16 = vpop.f32.mrf.mxu1 }
 0x131   : > { %835 = vst.msk [vmem:[%s1284_s26 + $0x40] sm:$0xff] %vm826_vm0, %v774_v13  ;;  %865 = vst.msk [vmem:[%s1284_s26 + $0x130] sm:$0xff] %vm826_vm0, %v804_v14  ;;  %v563_v17 = vadd.f32 %v1276_v5, %v562_v15  ;;  %v683_v18 = vadd.f32 %v1276_v5, %v682_v16 }
 0x132   : > { %v564_v19 = vpop.f32.mrf.mxu0  ;;  %v684_v20 = vpop.f32.mrf.mxu1 }
 0x133   : > { %v775_v21 = vmax.f32 %v563_v17, 0.0  ;;  %v805_v22 = vmax.f32 %v683_v18, 0.0 }
 0x134   : > { %v567_v23 = vpop.f32.mrf.mxu0  ;;  %v687_v24 = vpop.f32.mrf.mxu1 }
 0x135   : > { %836 = vst.msk [vmem:[%s1284_s26 + $0x48] sm:$0xff] %vm826_vm0, %v775_v21  ;;  %866 = vst.msk [vmem:[%s1284_s26 + $0x138] sm:$0xff] %vm826_vm0, %v805_v22  ;;  %v568_v25 = vadd.f32 %v1276_v5, %v567_v23  ;;  %v688_v26 = vadd.f32 %v1276_v5, %v687_v24 }
 0x136   : > { %v569_v27 = vpop.f32.mrf.mxu0  ;;  %v689_v28 = vpop.f32.mrf.mxu1 }
 0x137   : > { %v776_v29 = vmax.f32 %v568_v25, 0.0  ;;  %v806_v30 = vmax.f32 %v688_v26, 0.0 }
 0x138   : > { %v570_v31 = vpop.f32.mrf.mxu0  ;;  %v690_v32 = vpop.f32.mrf.mxu1 }
 0x139   : > { %837 = vst.msk [vmem:[%s1284_s26 + $0x50] sm:$0xff] %vm826_vm0, %v776_v29  ;;  %867 = vst.msk [vmem:[%s1284_s26 + $0x140] sm:$0xff] %vm826_vm0, %v806_v30  ;;  %v571_v33 = vadd.f32 %v1276_v5, %v570_v31  ;;  %v691_v34 = vadd.f32 %v1276_v5, %v690_v32 }
 0x13a   : > { %v572_v35 = vpop.f32.mrf.mxu0  ;;  %v692_v36 = vpop.f32.mrf.mxu1 }
 0x13b   : > { %v777_v37 = vmax.f32 %v571_v33, 0.0  ;;  %v807_v38 = vmax.f32 %v691_v34, 0.0 }
 0x13c   : > { %v575_v39 = vpop.f32.mrf.mxu0  ;;  %v695_v40 = vpop.f32.mrf.mxu1 }
 0x13d   : > { %838 = vst.msk [vmem:[%s1284_s26 + $0x58] sm:$0xff] %vm826_vm0, %v777_v37  ;;  %868 = vst.msk [vmem:[%s1284_s26 + $0x148] sm:$0xff] %vm826_vm0, %v807_v38  ;;  %v576_v41 = vadd.f32 %v1276_v5, %v575_v39  ;;  %v696_v42 = vadd.f32 %v1276_v5, %v695_v40 }
 0x13e   : > { %v577_v43 = vpop.f32.mrf.mxu0  ;;  %v697_v44 = vpop.f32.mrf.mxu1 }
 0x13f   : > { %v778_v45 = vmax.f32 %v576_v41, 0.0  ;;  %v808_v46 = vmax.f32 %v696_v42, 0.0 }
 0x140   : > { %v578_v47 = vpop.f32.mrf.mxu0  ;;  %v698_v48 = vpop.f32.mrf.mxu1 }
 0x141   : > { %839 = vst.msk [vmem:[%s1284_s26 + $0x60] sm:$0xff] %vm826_vm0, %v778_v45  ;;  %869 = vst.msk [vmem:[%s1284_s26 + $0x150] sm:$0xff] %vm826_vm0, %v808_v46  ;;  %v579_v49 = vadd.f32 %v1276_v5, %v578_v47  ;;  %v699_v50 = vadd.f32 %v1276_v5, %v698_v48 }
 0x142   : > { %v580_v51 = vpop.f32.mrf.mxu0  ;;  %v700_v52 = vpop.f32.mrf.mxu1 }
 0x143   : > { %v779_v53 = vmax.f32 %v579_v49, 0.0  ;;  %v809_v54 = vmax.f32 %v699_v50, 0.0 }
 0x144   : > { %v583_v55 = vpop.f32.mrf.mxu0  ;;  %v703_v56 = vpop.f32.mrf.mxu1 }
 0x145   : > { %840 = vst.msk [vmem:[%s1284_s26 + $0x68] sm:$0xff] %vm826_vm0, %v779_v53  ;;  %870 = vst.msk [vmem:[%s1284_s26 + $0x158] sm:$0xff] %vm826_vm0, %v809_v54  ;;  %v584_v57 = vadd.f32 %v1276_v5, %v583_v55  ;;  %v704_v58 = vadd.f32 %v1276_v5, %v703_v56 }
 0x146   : > { %v585_v59 = vpop.f32.mrf.mxu0  ;;  %v705_v60 = vpop.f32.mrf.mxu1 }
 0x147   : > { %v780_v61 = vmax.f32 %v584_v57, 0.0  ;;  %v810_v62 = vmax.f32 %v704_v58, 0.0 }
 0x148   : > { %v586_v63 = vpop.f32.mrf.mxu0  ;;  %v706_v0 = vpop.f32.mrf.mxu1 }
 0x149   : > { %841 = vst.msk [vmem:[%s1284_s26 + $0x70] sm:$0xff] %vm826_vm0, %v780_v61  ;;  %871 = vst.msk [vmem:[%s1284_s26 + $0x160] sm:$0xff] %vm826_vm0, %v810_v62  ;;  %v587_v1 = vadd.f32 %v1276_v5, %v586_v63  ;;  %v707_v2 = vadd.f32 %v1276_v5, %v706_v0 }
 0x14a   : > { %v588_v3 = vpop.f32.mrf.mxu0  ;;  %v708_v4 = vpop.f32.mrf.mxu1 }
 0x14b   : > { %v781_v6 = vmax.f32 %v587_v1, 0.0  ;;  %v811_v7 = vmax.f32 %v707_v2, 0.0 }
 0x14c   : > { %v591_v8 = vpop.f32.mrf.mxu0  ;;  %v711_v9 = vpop.f32.mrf.mxu1 }
 0x14d   : > { %842 = vst.msk [vmem:[%s1284_s26 + $0x78] sm:$0xff] %vm826_vm0, %v781_v6  ;;  %872 = vst.msk [vmem:[%s1284_s26 + $0x168] sm:$0xff] %vm826_vm0, %v811_v7  ;;  %v592_v10 = vadd.f32 %v1276_v5, %v591_v8  ;;  %v712_v11 = vadd.f32 %v1276_v5, %v711_v9 }
 0x14e   : > { %v593_v12 = vpop.f32.mrf.mxu0  ;;  %v713_v13 = vpop.f32.mrf.mxu1 }
 0x14f   : > { %v782_v14 = vmax.f32 %v592_v10, 0.0  ;;  %v812_v15 = vmax.f32 %v712_v11, 0.0 }
 0x150   : > { %v594_v16 = vpop.f32.mrf.mxu0  ;;  %v714_v17 = vpop.f32.mrf.mxu1 }
 0x151   : > { %843 = vst.msk [vmem:[%s1284_s26 + $0x80] sm:$0xff] %vm826_vm0, %v782_v14  ;;  %873 = vst.msk [vmem:[%s1284_s26 + $0x170] sm:$0xff] %vm826_vm0, %v812_v15  ;;  %v595_v18 = vadd.f32 %v1276_v5, %v594_v16  ;;  %v715_v19 = vadd.f32 %v1276_v5, %v714_v17 }
 0x152   : > { %v596_v20 = vpop.f32.mrf.mxu0  ;;  %v716_v21 = vpop.f32.mrf.mxu1 }
 0x153   : > { %v783_v22 = vmax.f32 %v595_v18, 0.0  ;;  %v813_v23 = vmax.f32 %v715_v19, 0.0 }
 0x154   : > { %v599_v24 = vpop.f32.mrf.mxu0  ;;  %v719_v25 = vpop.f32.mrf.mxu1 }
 0x155   : > { %844 = vst.msk [vmem:[%s1284_s26 + $0x88] sm:$0xff] %vm826_vm0, %v783_v22  ;;  %874 = vst.msk [vmem:[%s1284_s26 + $0x178] sm:$0xff] %vm826_vm0, %v813_v23  ;;  %v600_v26 = vadd.f32 %v1276_v5, %v599_v24  ;;  %v720_v27 = vadd.f32 %v1276_v5, %v719_v25 }
 0x156   : > { %v601_v28 = vpop.f32.mrf.mxu0  ;;  %v721_v29 = vpop.f32.mrf.mxu1 }
 0x157   : > { %v784_v30 = vmax.f32 %v600_v26, 0.0  ;;  %v814_v31 = vmax.f32 %v720_v27, 0.0 }
 0x158   : > { %v602_v32 = vpop.f32.mrf.mxu0  ;;  %v722_v33 = vpop.f32.mrf.mxu1 }
 0x159   : > { %845 = vst.msk [vmem:[%s1284_s26 + $0x90] sm:$0xff] %vm826_vm0, %v784_v30  ;;  %875 = vst.msk [vmem:[%s1284_s26 + $0x180] sm:$0xff] %vm826_vm0, %v814_v31  ;;  %v603_v34 = vadd.f32 %v1276_v5, %v602_v32  ;;  %v723_v35 = vadd.f32 %v1276_v5, %v722_v33 }
 0x15a   : > { %v604_v36 = vpop.f32.mrf.mxu0  ;;  %v724_v37 = vpop.f32.mrf.mxu1 }
 0x15b   : > { %v785_v38 = vmax.f32 %v603_v34, 0.0  ;;  %v815_v39 = vmax.f32 %v723_v35, 0.0 }
 0x15c   : > { %v607_v40 = vpop.f32.mrf.mxu0  ;;  %v727_v41 = vpop.f32.mrf.mxu1 }
 0x15d   : > { %846 = vst.msk [vmem:[%s1284_s26 + $0x98] sm:$0xff] %vm826_vm0, %v785_v38  ;;  %876 = vst.msk [vmem:[%s1284_s26 + $0x188] sm:$0xff] %vm826_vm0, %v815_v39  ;;  %v608_v42 = vadd.f32 %v1276_v5, %v607_v40  ;;  %v728_v43 = vadd.f32 %v1276_v5, %v727_v41 }
 0x15e   : > { %v609_v44 = vpop.f32.mrf.mxu0  ;;  %v729_v45 = vpop.f32.mrf.mxu1 }
 0x15f   : > { %v786_v46 = vmax.f32 %v608_v42, 0.0  ;;  %v816_v47 = vmax.f32 %v728_v43, 0.0 }
 0x160   : > { %v610_v48 = vpop.f32.mrf.mxu0  ;;  %v730_v49 = vpop.f32.mrf.mxu1 }
 0x161   : > { %847 = vst.msk [vmem:[%s1284_s26 + $0xa0] sm:$0xff] %vm826_vm0, %v786_v46  ;;  %877 = vst.msk [vmem:[%s1284_s26 + $0x190] sm:$0xff] %vm826_vm0, %v816_v47  ;;  %v611_v50 = vadd.f32 %v1276_v5, %v610_v48  ;;  %v731_v51 = vadd.f32 %v1276_v5, %v730_v49 }
 0x162   : > { %v612_v52 = vpop.f32.mrf.mxu0  ;;  %v732_v53 = vpop.f32.mrf.mxu1 }
 0x163   : > { %v787_v54 = vmax.f32 %v611_v50, 0.0  ;;  %v817_v55 = vmax.f32 %v731_v51, 0.0 }
 0x164   : > { %v615_v56 = vpop.f32.mrf.mxu0  ;;  %v735_v57 = vpop.f32.mrf.mxu1 }
 0x165   : > { %848 = vst.msk [vmem:[%s1284_s26 + $0xa8] sm:$0xff] %vm826_vm0, %v787_v54  ;;  %878 = vst.msk [vmem:[%s1284_s26 + $0x198] sm:$0xff] %vm826_vm0, %v817_v55  ;;  %v616_v58 = vadd.f32 %v1276_v5, %v615_v56  ;;  %v736_v59 = vadd.f32 %v1276_v5, %v735_v57 }
 0x166   : > { %v617_v60 = vpop.f32.mrf.mxu0  ;;  %v737_v61 = vpop.f32.mrf.mxu1 }
 0x167   : > { %v788_v62 = vmax.f32 %v616_v58, 0.0  ;;  %v818_v63 = vmax.f32 %v736_v59, 0.0 }
 0x168   : > { %v618_v0 = vpop.f32.mrf.mxu0  ;;  %v738_v1 = vpop.f32.mrf.mxu1 }
 0x169   : > { %849 = vst.msk [vmem:[%s1284_s26 + $0xb0] sm:$0xff] %vm826_vm0, %v788_v62  ;;  %879 = vst.msk [vmem:[%s1284_s26 + $0x1a0] sm:$0xff] %vm826_vm0, %v818_v63  ;;  %v619_v2 = vadd.f32 %v1276_v5, %v618_v0  ;;  %v739_v3 = vadd.f32 %v1276_v5, %v738_v1 }
 0x16a   : > { %v620_v4 = vpop.f32.mrf.mxu0  ;;  %v740_v6 = vpop.f32.mrf.mxu1 }
 0x16b   : > { %v789_v7 = vmax.f32 %v619_v2, 0.0  ;;  %v819_v8 = vmax.f32 %v739_v3, 0.0 }
 0x16c   : > { %v623_v9 = vpop.f32.mrf.mxu0  ;;  %v743_v10 = vpop.f32.mrf.mxu1 }
 0x16d   : > { %850 = vst.msk [vmem:[%s1284_s26 + $0xb8] sm:$0xff] %vm826_vm0, %v789_v7  ;;  %880 = vst.msk [vmem:[%s1284_s26 + $0x1a8] sm:$0xff] %vm826_vm0, %v819_v8  ;;  %v624_v11 = vadd.f32 %v1276_v5, %v623_v9  ;;  %v744_v12 = vadd.f32 %v1276_v5, %v743_v10 }
 0x16e   : > { %v625_v13 = vpop.f32.mrf.mxu0  ;;  %v745_v14 = vpop.f32.mrf.mxu1 }
 0x16f   : > { %v790_v15 = vmax.f32 %v624_v11, 0.0  ;;  %v820_v16 = vmax.f32 %v744_v12, 0.0 }
 0x170   : > { %v626_v17 = vpop.f32.mrf.mxu0  ;;  %v746_v18 = vpop.f32.mrf.mxu1 }
 0x171   : > { %851 = vst.msk [vmem:[%s1284_s26 + $0xc0] sm:$0xff] %vm826_vm0, %v790_v15  ;;  %881 = vst.msk [vmem:[%s1284_s26 + $0x1b0] sm:$0xff] %vm826_vm0, %v820_v16  ;;  %v627_v19 = vadd.f32 %v1276_v5, %v626_v17  ;;  %v747_v20 = vadd.f32 %v1276_v5, %v746_v18 }
 0x172   : > { %v628_v21 = vpop.f32.mrf.mxu0  ;;  %v748_v22 = vpop.f32.mrf.mxu1 }
 0x173   : > { %v791_v23 = vmax.f32 %v627_v19, 0.0  ;;  %v821_v24 = vmax.f32 %v747_v20, 0.0 }
 0x174   : > { %v631_v25 = vpop.f32.mrf.mxu0  ;;  %v751_v26 = vpop.f32.mrf.mxu1 }
 0x175   : > { %852 = vst.msk [vmem:[%s1284_s26 + $0xc8] sm:$0xff] %vm826_vm0, %v791_v23  ;;  %882 = vst.msk [vmem:[%s1284_s26 + $0x1b8] sm:$0xff] %vm826_vm0, %v821_v24  ;;  %v632_v27 = vadd.f32 %v1276_v5, %v631_v25  ;;  %v752_v28 = vadd.f32 %v1276_v5, %v751_v26 }
 0x176   : > { %v633_v29 = vpop.f32.mrf.mxu0  ;;  %v753_v30 = vpop.f32.mrf.mxu1 }
 0x177   : > { %v792_v31 = vmax.f32 %v632_v27, 0.0  ;;  %v822_v32 = vmax.f32 %v752_v28, 0.0 }
 0x178   : > { %v634_v33 = vpop.f32.mrf.mxu0  ;;  %v754_v34 = vpop.f32.mrf.mxu1 }
 0x179   : > { %853 = vst.msk [vmem:[%s1284_s26 + $0xd0] sm:$0xff] %vm826_vm0, %v792_v31  ;;  %883 = vst.msk [vmem:[%s1284_s26 + $0x1c0] sm:$0xff] %vm826_vm0, %v822_v32  ;;  %v635_v35 = vadd.f32 %v1276_v5, %v634_v33  ;;  %v755_v36 = vadd.f32 %v1276_v5, %v754_v34 }
 0x17a   : > { %v636_v37 = vpop.f32.mrf.mxu0  ;;  %v756_v38 = vpop.f32.mrf.mxu1 }
 0x17b   : > { %v793_v39 = vmax.f32 %v635_v35, 0.0  ;;  %v823_v40 = vmax.f32 %v755_v36, 0.0 }
 0x17c   : > { %v639_v41 = vpop.f32.mrf.mxu0  ;;  %v759_v42 = vpop.f32.mrf.mxu1 }
 0x17d   : > { %854 = vst.msk [vmem:[%s1284_s26 + $0xd8] sm:$0xff] %vm826_vm0, %v793_v39  ;;  %884 = vst.msk [vmem:[%s1284_s26 + $0x1c8] sm:$0xff] %vm826_vm0, %v823_v40  ;;  %v640_v43 = vadd.f32 %v1276_v5, %v639_v41  ;;  %v760_v44 = vadd.f32 %v1276_v5, %v759_v42 }
 0x17e   : > { %v641_v45 = vpop.f32.mrf.mxu0  ;;  %v761_v46 = vpop.f32.mrf.mxu1 }
 0x17f   : > { %v794_v47 = vmax.f32 %v640_v43, 0.0  ;;  %v824_v48 = vmax.f32 %v760_v44, 0.0 }
 0x180   : > { %v642_v49 = vpop.f32.mrf.mxu0  ;;  %v762_v50 = vpop.f32.mrf.mxu1 }
 0x181   : > { %855 = vst.msk [vmem:[%s1284_s26 + $0xe0] sm:$0xff] %vm826_vm0, %v794_v47  ;;  %885 = vst.msk [vmem:[%s1284_s26 + $0x1d0] sm:$0xff] %vm826_vm0, %v824_v48  ;;  %v643_v51 = vadd.f32 %v1276_v5, %v642_v49  ;;  %v763_v52 = vadd.f32 %v1276_v5, %v762_v50 }
 0x182   : > { %v644_v53 = vpop.f32.mrf.mxu0  ;;  %v764_v54 = vpop.f32.mrf.mxu1 }
 0x183   : > { %v795_v55 = vmax.f32 %v643_v51, 0.0  ;;  %v825_v56 = vmax.f32 %v763_v52, 0.0 }
 0x185   : > { %856 = vst.msk [vmem:[%s1284_s26 + $0xe8] sm:$0xff] %vm826_vm0, %v795_v55  ;;  %886 = vst.msk [vmem:[%s1284_s26 + $0x1d8] sm:$0xff] %vm826_vm0, %v825_v56 }
 0x186 PF: > { %s13_s12 = sadd.s32 1, %s1034_s12  }
 0x187   : > { %p10_p4 = scmp.ge.s32.totalorder %s13_s12, 4  }
 0x189   :  { %12 = sbr.rel (!%p10_p4) target bundleno = 1 (0x1), region = 62 }

// kernel: cdpn_forward.3
= control target key start
LH: loop header
LB: loop body
LE: loop exit
PB: predicated region body
PF: predicated region fallthrough
CT: control target
= control target key end

     0   :  { %vm111_vm0 = vcmask 1042432   ;;  %vm62_vm1 = vcmask 23552   ;;  %s2262_s0 = inlined_call_operand.vmem [shape: f32[128,3], index: 0, kind: input, shape index: {}]   ;;  %s2263_s1 = inlined_call_operand.vmem [shape: f32[3,32], index: 1, kind: input, shape index: {}]   ;;  %s2264_s2 = inlined_call_operand.vmem [shape: f32[1,32], index: 2, kind: input, shape index: {}]   ;;  %s2265_s3 = inlined_call_operand.vmem [shape: f32[32,4], index: 3, kind: input, shape index: {}]   ;;  %s2266_s4 = inlined_call_operand.vmem [shape: f32[1,4], index: 4, kind: input, shape index: {}]   ;;  %s2267_s5 = inlined_call_operand.vmem [shape: f32[32,3], index: 5, kind: input, shape index: {}]   ;;  %s2268_s6 = inlined_call_operand.vmem [shape: f32[1,3], index: 6, kind: input, shape index: {}]   ;;  %s2269_s7 = inlined_call_operand.vmem [shape: f32[4,128,24], index: 7, kind: input, shape index: {}]   ;;  %s2270_s8 = inlined_call_operand.vmem [shape: f32[1,24], index: 8, kind: input, shape index: {}]   ;;  %s2271_s9 = inlined_call_operand.vmem [shape: f32[2,128], index: 9, kind: input, shape index: {}]   ;;  %s2272_s10 = inlined_call_operand.vmem [shape: f32[2,24], index: 10, kind: output, shape index: {0}]   ;;  %s2273_s11 = inlined_call_operand.hbm [shape: f32[2,3], index: 11, kind: output, shape index: {1}]  }
   0x1   :  { %v54_v0 = vld [vmem:[%s2263_s1] sm:$0x7]  ;;  %v39_v2 = vld [vmem:[%s2262_s0 + $0x8] sm:$0xff]  ;;  %v40_v3 = vld [vmem:[%s2262_s0 + $0x10] sm:$0xff] }
   0x2   :  { %v38_v1 = vld [vmem:[%s2262_s0] sm:$0xff]  ;;  %1349 = vmatprep.subr.msk.mxu0 %vm111_vm0, %v54_v0  ;;  %v41_v4 = vld [vmem:[%s2262_s0 + $0x18] sm:$0xff] }
   0x3   :  { %1351 = vmatprep.mubr.msk.f32.mxu0 %vm62_vm1, %v38_v1  ;;  %1350 = vmatpush3.msk.msra.mxu0 %vm111_vm0, %v54_v0  ;;  %v42_v5 = vld [vmem:[%s2262_s0 + $0x20] sm:$0xff] }
   0x4   :  { %1352 = vmatmul.mubr.msk.f32.vlgmr.msra.gmra.mxu0 %vm62_vm1, %v39_v2 }
   0x5   :  { %1354 = vmatprep.mubr.msk.f32.mxu0 %vm62_vm1, %v40_v3 }
   0x6   :  { %17 = vsyncpa [#allocation3], 0  ;;  %v43_v6 = vld [vmem:[%s2262_s0 + $0x28] sm:$0xff]  ;;  %v44_v7 = vld [vmem:[%s2262_s0 + $0x30] sm:$0xff]  ;;  %v1572_v21 = vmov 0.0   ;;  %vm287_vm2 = vcmask 261120  }
   0x7   :  { %v45_v8 = vld [vmem:[%s2262_s0 + $0x38] sm:$0xff]  ;;  %v46_v9 = vld [vmem:[%s2262_s0 + $0x40] sm:$0xff]  ;;  %v47_v10 = vld [vmem:[%s2262_s0 + $0x48] sm:$0xff]  ;;  %1453 = vmatprep.subr.mxu0 %v1572_v21  ;;  %vm1575_vm3 = vmmov 0   ;;  %vm637_vm4 = vcmask 17408   ;;  %s1578_s28 = smov [#allocation2]  }
   0x8   :  { %1355 = vmatmul.mubr.msk.f32.gmra.mxu0 %vm62_vm1, %v41_v4  ;;  %v48_v11 = vld [vmem:[%s2262_s0 + $0x50] sm:$0xff]  ;;  %v49_v12 = vld [vmem:[%s2262_s0 + $0x58] sm:$0xff]  ;;  %v50_v13 = vld [vmem:[%s2262_s0 + $0x60] sm:$0xff] }
   0x9   :  { %1357 = vmatprep.mubr.msk.f32.mxu0 %vm62_vm1, %v42_v5  ;;  %v51_v14 = vld [vmem:[%s2262_s0 + $0x68] sm:$0xff]  ;;  %v52_v15 = vld [vmem:[%s2262_s0 + $0x70] sm:$0xff]  ;;  %v53_v16 = vld [vmem:[%s2262_s0 + $0x78] sm:$0xff] }
   0xa   :  { %v279_v17 = vld [vmem:[%s2265_s3 + $0x18] sm:$0xff]  ;;  %v278_v18 = vld [vmem:[%s2265_s3 + $0x10] sm:$0xff]  ;;  %v277_v19 = vld [vmem:[%s2265_s3 + $0x8] sm:$0xff] }
   0xb   :  { %1375 = vmatprep.subr.mxu1 %v279_v17  ;;  %v276_v20 = vld [vmem:[%s2265_s3] sm:$0xff] }
   0xc   :  { %1358 = vmatmul.mubr.msk.f32.gmra.mxu0 %vm62_vm1, %v43_v6  ;;  %1376 = vmatpush3.msra.mxu1 %v279_v17  ;;  %v1187_v22 = vld [vmem:[%s2264_s2] ss:$0 sm:$0xff]  ;;  %v1574_v17 = vmov 1  }
   0xd   :  { %1360 = vmatprep.mubr.msk.f32.mxu0 %vm62_vm1, %v44_v7  ;;  %1377 = vmatprep.subr.mxu1 %v278_v18  ;;  %v1573_v7 = vmov 0  }
   0xe   :  { %1378 = vmatpush3.msra.mxu1 %v278_v18  ;;  %1495 = vset.pattern.permute.xlu0 %v1573_v7 }
   0xf   :  { %1379 = vmatprep.subr.mxu1 %v277_v19  ;;  %1496 = vset.pattern.permute.xlu1 %v1573_v7 }
  0x10   :  { %1361 = vmatmul.mubr.msk.f32.gmra.mxu0 %vm62_vm1, %v45_v8  ;;  %1380 = vmatpush3.msra.mxu1 %v277_v19  ;;  %v1802_v8 = vld [vmem:[%s2266_s4] ss:$0 sm:$0xff] }
  0x11   :  { %1363 = vmatprep.mubr.msk.f32.mxu0 %vm62_vm1, %v46_v9  ;;  %1381 = vmatprep.subr.mxu1 %v276_v20 }
  0x12   :  { %1382 = vmatpush3.msra.mxu1 %v276_v20 }
  0x13   :  { %1407 = vmatprep.subr.mxu1 %v1572_v21 }
  0x14   :  { %1364 = vmatmul.mubr.msk.f32.gmra.mxu0 %vm62_vm1, %v47_v10 }
  0x15   :  { %1366 = vmatprep.mubr.msk.f32.mxu0 %vm62_vm1, %v48_v11 }
  0x18   :  { %1367 = vmatmul.mubr.msk.f32.gmra.mxu0 %vm62_vm1, %v49_v12 }
  0x19   :  { %1369 = vmatprep.mubr.msk.f32.mxu0 %vm62_vm1, %v50_v13 }
  0x1c   :  { %1370 = vmatmul.mubr.msk.f32.gmra.mxu0 %vm62_vm1, %v51_v14 }
  0x1d   :  { %1372 = vmatprep.mubr.msk.f32.mxu0 %vm62_vm1, %v52_v15 }
  0x20   :  { %1373 = vmatmul.mubr.msk.f32.gmra.mxu0 %vm62_vm1, %v53_v16 }
  0x21   :  { %1485 = vmatprep.mubr.msk.f32.mxu0 %vm1575_vm3, %v1572_v21 }
  0xc4   :  { %v1353_v23 = vpop.f32.mrf.mxu0 }
  0xc5   :  { %v1723_v24 = vadd.f32 %v1353_v23, %v1187_v22 }
  0xc6   :  { %v181_v25 = vpop.f32.mrf.mxu0 }
  0xc7   :  { %v1725_v26 = vadd.f32 %v1187_v22, %v181_v25  ;;  %v261_v29 = vmax.f32 %v1723_v24, 0.0  ;;  %v1576_v25 = vmov 2  }
  0xc8   :  { %v1356_v27 = vpop.f32.mrf.mxu0 }
  0xc9   :  { %v260_v28 = vmax.f32 %v1725_v26, 0.0  ;;  %v1729_v30 = vadd.f32 %v1356_v27, %v1187_v22 }
  0xca   :  { %v191_v31 = vpop.f32.mrf.mxu0 }
  0xcb   :  { %v1731_v32 = vadd.f32 %v1187_v22, %v191_v31  ;;  %1383 = vmatprep.mubr.msk.f32.mxu1 %vm287_vm2, %v260_v28  ;;  %v263_v36 = vmax.f32 %v1729_v30, 0.0  ;;  %v1577_v30 = vmov 3  }
  0xcc   :  { %v1359_v33 = vpop.f32.mrf.mxu0  ;;  %1384 = vmatmul.mubr.msk.f32.vlgmr.msra.gmra.mxu1 %vm287_vm2, %v261_v29 }
  0xcd   :  { %v262_v34 = vmax.f32 %v1731_v32, 0.0  ;;  %v1740_v35 = vadd.f32 %v1359_v33, %v1187_v22 }
  0xce   :  { %v201_v37 = vpop.f32.mrf.mxu0 }
  0xcf   :  { %v1743_v38 = vadd.f32 %v1187_v22, %v201_v37  ;;  %1386 = vmatprep.mubr.msk.f32.mxu1 %vm287_vm2, %v262_v34  ;;  %v265_v39 = vmax.f32 %v1740_v35, 0.0 }
  0xd0   :  { %v1362_v40 = vpop.f32.mrf.mxu0  ;;  %1387 = vmatmul.mubr.msk.f32.gmra.mxu1 %vm287_vm2, %v263_v36 }
  0xd1   :  { %v264_v41 = vmax.f32 %v1743_v38, 0.0  ;;  %v217_v42 = vadd.f32 %v1362_v40, %v1187_v22 }
  0xd2   :  { %v211_v43 = vpop.f32.mrf.mxu0 }
  0xd3   :  { %v212_v44 = vadd.f32 %v1187_v22, %v211_v43  ;;  %1389 = vmatprep.mubr.msk.f32.mxu1 %vm287_vm2, %v264_v41  ;;  %v267_v45 = vmax.f32 %v217_v42, 0.0 }
  0xd4   :  { %v1365_v46 = vpop.f32.mrf.mxu0  ;;  %1390 = vmatmul.mubr.msk.f32.gmra.mxu1 %vm287_vm2, %v265_v39 }
  0xd5   :  { %v266_v47 = vmax.f32 %v212_v44, 0.0  ;;  %v227_v48 = vadd.f32 %v1365_v46, %v1187_v22 }
  0xd6   :  { %v221_v49 = vpop.f32.mrf.mxu0 }
  0xd7   :  { %v222_v50 = vadd.f32 %v1187_v22, %v221_v49  ;;  %1392 = vmatprep.mubr.msk.f32.mxu1 %vm287_vm2, %v266_v47  ;;  %v269_v51 = vmax.f32 %v227_v48, 0.0  ;;  %v1227_v48 = vld [vmem:[%s2269_s7 + $0x98] sm:$0xff] }
  0xd8   :  { %v1368_v52 = vpop.f32.mrf.mxu0  ;;  %1393 = vmatmul.mubr.msk.f32.gmra.mxu1 %vm287_vm2, %v267_v45 }
  0xd9   :  { %v268_v53 = vmax.f32 %v222_v50, 0.0  ;;  %v237_v54 = vadd.f32 %v1368_v52, %v1187_v22 }
  0xda   :  { %v231_v55 = vpop.f32.mrf.mxu0 }
  0xdb   :  { %v232_v56 = vadd.f32 %v1187_v22, %v231_v55  ;;  %1395 = vmatprep.mubr.msk.f32.mxu1 %vm287_vm2, %v268_v53  ;;  %v271_v59 = vmax.f32 %v237_v54, 0.0  ;;  %v1243_v54 = vld [vmem:[%s2269_s7 + $0x118] sm:$0xff] }
  0xdc   :  { %v1371_v57 = vpop.f32.mrf.mxu0  ;;  %1396 = vmatmul.mubr.msk.f32.gmra.mxu1 %vm287_vm2, %v269_v51 }
  0xdd   :  { %v270_v58 = vmax.f32 %v232_v56, 0.0  ;;  %v247_v60 = vadd.f32 %v1371_v57, %v1187_v22 }
  0xde   :  { %v241_v61 = vpop.f32.mrf.mxu0 }
  0xdf   :  { %v242_v62 = vadd.f32 %v1187_v22, %v241_v61  ;;  %1398 = vmatprep.mubr.msk.f32.mxu1 %vm287_vm2, %v270_v58  ;;  %v273_v2 = vmax.f32 %v247_v60, 0.0  ;;  %v641_v60 = vld [vmem:[%s2269_s7 + $0x10] sm:$0xff] }
  0xe0   :  { %v1374_v63 = vpop.f32.mrf.mxu0  ;;  %1399 = vmatmul.mubr.msk.f32.gmra.mxu1 %vm287_vm2, %v271_v59 }
  0xe1   :  { %v272_v0 = vmax.f32 %v242_v62, 0.0  ;;  %v257_v1 = vadd.f32 %v1374_v63, %v1187_v22 }
  0xe2   :  { %v251_v3 = vpop.f32.mrf.mxu0 }
  0xe3   :  { %v275_v4 = vmax.f32 %v257_v1, 0.0  ;;  %v252_v5 = vadd.f32 %v1187_v22, %v251_v3  ;;  %1401 = vmatprep.mubr.msk.f32.mxu1 %vm287_vm2, %v272_v0  ;;  %v1827_v22 = vld [vmem:[%s2271_s9] sm:$0x3]  ;;  %v1229_v1 = vld [vmem:[%s2269_s7 + $0xa8] sm:$0xff] }
  0xe4   :  { %1402 = vmatmul.mubr.msk.f32.gmra.mxu1 %vm287_vm2, %v273_v2 }
  0xe5   :  { %v274_v6 = vmax.f32 %v252_v5, 0.0  ;;  %1408 = vmatpush3.msra.mxu1 %v275_v4 }
  0xe6   :  { %1409 = vmatprep.subr.mxu1 %v1572_v21 }
  0xe7   :  { %1410 = vmatpush3.msra.mxu1 %v274_v6  ;;  %1404 = vmatprep.mubr.msk.f32.mxu1 %vm287_vm2, %v274_v6 }
  0xe8   :  { %1411 = vmatprep.subr.mxu1 %v1572_v21  ;;  %1405 = vmatmul.mubr.msk.f32.gmra.mxu1 %vm287_vm2, %v275_v4 }
  0xe9   :  { %1412 = vmatpush3.msra.mxu1 %v273_v2  ;;  %1439 = vmatprep.mubr.msk.f32.mxu1 %vm1575_vm3, %v1572_v21  ;;  %v644_v2 = vld [vmem:[%s2269_s7 + $0x28] sm:$0xff] }
  0xea   :  { %1413 = vmatprep.subr.mxu1 %v1572_v21 }
  0xeb   :  { %1414 = vmatpush3.msra.mxu1 %v272_v0 }
  0xec   :  { %1415 = vmatprep.subr.mxu1 %v1572_v21 }
  0xed   :  { %1416 = vmatpush3.msra.mxu1 %v271_v59 }
  0xee   :  { %1417 = vmatprep.subr.mxu1 %v1572_v21 }
  0xef   :  { %1418 = vmatpush3.msra.mxu1 %v270_v58  ;;  %v1226_v58 = vld [vmem:[%s2269_s7 + $0x90] sm:$0xff] }
  0xf0   :  { %1419 = vmatprep.subr.mxu1 %v1572_v21 }
  0xf1   :  { %1420 = vmatpush3.msra.mxu1 %v269_v51 }
  0xf2   :  { %1421 = vmatprep.subr.mxu1 %v1572_v21 }
  0xf3   :  { %1422 = vmatpush3.msra.mxu1 %v268_v53 }
  0xf4   :  { %1423 = vmatprep.subr.mxu1 %v1572_v21 }
  0xf5   :  { %1424 = vmatpush3.msra.mxu1 %v267_v45 }
  0xf6   :  { %1425 = vmatprep.subr.mxu1 %v1572_v21 }
  0xf7   :  { %1426 = vmatpush3.msra.mxu1 %v266_v47  ;;  %v642_v47 = vld [vmem:[%s2269_s7 + $0x18] sm:$0xff] }
  0xf8   :  { %1427 = vmatprep.subr.mxu1 %v1572_v21 }
  0xf9   :  { %1428 = vmatpush3.msra.mxu1 %v265_v39 }
  0xfa   :  { %1429 = vmatprep.subr.mxu1 %v1572_v21 }
  0xfb   :  { %1430 = vmatpush3.msra.mxu1 %v264_v41 }
  0xfc   :  { %1431 = vmatprep.subr.mxu1 %v1572_v21 }
  0xfd   :  { %1432 = vmatpush3.msra.mxu1 %v263_v36 }
  0xfe   :  { %1433 = vmatprep.subr.mxu1 %v1572_v21 }
  0xff   :  { %1434 = vmatpush3.msra.mxu1 %v262_v34 }
 0x100   :  { %1435 = vmatprep.subr.mxu1 %v1572_v21 }
 0x101   :  { %1436 = vmatpush3.msra.mxu1 %v261_v29 }
 0x102   :  { %1437 = vmatprep.subr.mxu1 %v1572_v21 }
 0x103   :  { %1438 = vmatpush3.msra.mxu1 %v260_v28 }
 0x104   :  { %1442 = vmatprep.subr.mxu1 %v1572_v21  ;;  %1440 = vmatmul.mubr.f32.vlgmr.msra.gmra.mxu1 %v1827_v22 }
 0x105   :  { %1450 = vmatprep.mubr.msk.f32.mxu1 %vm1575_vm3, %v1572_v21 }
 0x18c   :  { %v1385_v9 = vpop.f32.mrf.mxu1 }
 0x18d   :  { %v1805_v10 = vadd.f32 %v1385_v9, %v1802_v8 }
 0x18e   :  { %v402_v11 = vpop.f32.mrf.mxu1 }
 0x18f   :  { %v1808_v12 = vadd.f32 %v1802_v8, %v402_v11  ;;  %662 = vperm.xlu0 %1495, %v1805_v10  }
 0x190   :  { %v1388_v13 = vpop.f32.mrf.mxu1 }
 0x191   :  { %v1812_v14 = vadd.f32 %v1388_v13, %v1802_v8  ;;  %v1245_v13 = vld [vmem:[%s2269_s7 + $0x128] sm:$0xff] }
 0x192   :  { %v412_v15 = vpop.f32.mrf.mxu1 }
 0x193   :  { %v1815_v16 = vadd.f32 %v1802_v8, %v412_v15  ;;  %672 = vperm.xlu1 %1496, %v1812_v14   ;;  %1500 = vset.pattern.permute.xlu0 %v1574_v17 }
 0x194   :  { %v1391_v18 = vpop.f32.mrf.mxu1 }
 0x195   :  { %777 = vperm.xlu0 %1500, %v1815_v16   ;;  %v428_v19 = vadd.f32 %v1391_v18, %v1802_v8 }
 0x196   :  { %v422_v20 = vpop.f32.mrf.mxu1 }
 0x197   :  { %1497 = vset.pattern.permute.xlu1 %v1574_v17  ;;  %v1831_v23 = vadd.f32 %v1802_v8, %v422_v20 }
 0x198   :  { %781 = vperm.xlu1 %1497, %v1812_v14   ;;  %v1394_v24 = vpop.f32.mrf.mxu1 }
 0x199   :  { %789 = vperm.xlu0 %1500, %v428_v19   ;;  %v1840_v26 = vadd.f32 %v1394_v24, %v1802_v8 }
 0x19a   :  { %v432_v27 = vpop.f32.mrf.mxu1 }
 0x19b   :  { %v433_v28 = vadd.f32 %v1802_v8, %v432_v27 }
 0x19c   :  { %1498 = vset.pattern.permute.xlu1 %v1576_v25  ;;  %v1397_v29 = vpop.f32.mrf.mxu1 }
 0x19d   :  { %894 = vperm.xlu1 %1498, %v1812_v14   ;;  %1503 = vset.pattern.permute.xlu0 %v1573_v7  ;;  %v448_v31 = vadd.f32 %v1397_v29, %v1802_v8  ;;  %v643_v29 = vld [vmem:[%s2269_s7 + $0x20] sm:$0xff] }
 0x19e   :  { %677 = vperm.xlu0 %1503, %v1831_v23   ;;  %v442_v32 = vpop.f32.mrf.mxu1 }
 0x19f   :  { %v443_v33 = vadd.f32 %v1802_v8, %v442_v32  ;;  %v1228_v32 = vld [vmem:[%s2269_s7 + $0xa0] sm:$0xff] }
 0x1a0   :  { %v1400_v34 = vpop.f32.mrf.mxu1 }
 0x1a1   :  { %1499 = vset.pattern.permute.xlu1 %v1573_v7  ;;  %v1853_v35 = vadd.f32 %v1400_v34, %v1802_v8 }
 0x1a2   :  { %692 = vperm.xlu0 %1503, %v1840_v26   ;;  %667 = vperm.xlu1 %1499, %v1815_v16   ;;  %v452_v36 = vpop.f32.mrf.mxu1 }
 0x1a3   :  { %v453_v37 = vadd.f32 %v1802_v8, %v452_v36 }
 0x1a4   :  { %v1403_v38 = vpop.f32.mrf.mxu1 }
 0x1a5   :  { %v1866_v39 = vadd.f32 %v1403_v38, %v1802_v8 }
 0x1a6   :  { %1511 = vset.pattern.permute.xlu0 %v1577_v30  ;;  %682 = vperm.xlu1 %1499, %v428_v19   ;;  %v462_v40 = vpop.f32.mrf.mxu1 }
 0x1a7   :  { %1019 = vperm.xlu0 %1511, %v433_v28   ;;  %v1876_v41 = vadd.f32 %v1802_v8, %v462_v40  ;;  %v1231_v40 = vld [vmem:[%s2269_s7 + $0xb8] sm:$0xff] }
 0x1a8   :  { %v1406_v42 = vpop.f32.mrf.mxu1 }
 0x1a9   :  { %v1882_v43 = vadd.f32 %v1406_v42, %v1802_v8 }
 0x1aa   :  { %1501 = vset.pattern.permute.xlu1 %v1576_v25  ;;  %v472_v18 = vpop.f32.mrf.mxu1 }
 0x1ab   :  { %1031 = vperm.xlu0 %1511, %v448_v31   ;;  %902 = vperm.xlu1 %1501, %v428_v19   ;;  %v473_v24 = vadd.f32 %v1802_v8, %v472_v18 }
 0x1af   :  { %1516 = vset.pattern.permute.xlu0 %v1574_v17  ;;  %1502 = vset.pattern.permute.xlu1 %v1577_v30 }
 0x1b0   :  { %801 = vperm.xlu0 %1516, %v443_v33   ;;  %1015 = vperm.xlu1 %1502, %v428_v19  }
 0x1b4   :  { %813 = vperm.xlu0 %1516, %v1853_v35   ;;  %1504 = vset.pattern.permute.xlu1 %v1574_v17 }
 0x1b5   :  { %785 = vperm.xlu1 %1504, %v1831_v23  }
 0x1b8   :  { %1522 = vset.pattern.permute.xlu0 %v1573_v7 }
 0x1b9   :  { %707 = vperm.xlu0 %1522, %v453_v37   ;;  %1505 = vset.pattern.permute.xlu1 %v1577_v30 }
 0x1ba   :  { %1011 = vperm.xlu1 %1505, %v1831_v23  }
 0x1bd   :  { %1524 = vset.pattern.permute.xlu0 %v1576_v25 }
 0x1be   :  { %922 = vperm.xlu0 %1524, %v453_v37   ;;  %1506 = vset.pattern.permute.xlu1 %v1574_v17 }
 0x1bf   :  { %797 = vperm.xlu1 %1506, %v1840_v26  }
 0x1c2   :  { %1526 = vset.pattern.permute.xlu0 %v1573_v7 }
 0x1c3   :  { %722 = vperm.xlu0 %1526, %v1866_v39   ;;  %1507 = vset.pattern.permute.xlu1 %v1577_v30 }
 0x1c4   :  { %1023 = vperm.xlu1 %1507, %v1840_v26   ;;  %v548_v18 = vpop.f32.mrf.mxu1 }
 0x1c7   :  { %1528 = vset.pattern.permute.xlu0 %v1576_v25 }
 0x1c8   :  { %934 = vperm.xlu0 %1528, %v1866_v39   ;;  %1508 = vset.pattern.permute.xlu1 %v1573_v7 }
 0x1c9   :  { %687 = vperm.xlu1 %1508, %v433_v28  }
 0x1cc   :  { %1533 = vset.pattern.permute.xlu0 %v1577_v30 }
 0x1cd   :  { %1043 = vperm.xlu0 %1533, %v1876_v41   ;;  %1509 = vset.pattern.permute.xlu1 %v1574_v17 }
 0x1ce   :  { %793 = vperm.xlu1 %1509, %v433_v28  }
 0x1d1   :  { %1534 = vset.pattern.permute.xlu0 %v1573_v7 }
 0x1d2   :  { %732 = vperm.xlu0 %1534, %v1882_v43   ;;  %1510 = vset.pattern.permute.xlu1 %v1576_v25 }
 0x1d3   :  { %906 = vperm.xlu1 %1510, %v433_v28  }
 0x1d6   :  { %1535 = vset.pattern.permute.xlu0 %v1574_v17 }
 0x1d7   :  { %829 = vperm.xlu0 %1535, %v1882_v43   ;;  %1512 = vset.pattern.permute.xlu1 %v1573_v7 }
 0x1d8   :  { %702 = vperm.xlu1 %1512, %v448_v31  }
 0x1db   :  { %1536 = vset.pattern.permute.xlu0 %v1577_v30 }
 0x1dc   :  { %1055 = vperm.xlu0 %1536, %v1882_v43   ;;  %1513 = vset.pattern.permute.xlu1 %v1574_v17 }
 0x1dd   :  { %805 = vperm.xlu1 %1513, %v448_v31  }
 0x1e0   :  { %1537 = vset.pattern.permute.xlu0 %v1576_v25 }
 0x1e1   :  { %910 = vperm.xlu0 %1537, %v1840_v26   ;;  %1514 = vset.pattern.permute.xlu1 %v1576_v25 }
 0x1e2   :  { %918 = vperm.xlu1 %1514, %v448_v31  }
 0x1e5   :  { %898 = vperm.xlu0 %1537, %v1831_v23   ;;  %v1261_v23 = vld [vmem:[%s2269_s7 + $0x1a8] sm:$0xff] }
 0x1e6   :  { %1515 = vset.pattern.permute.xlu1 %v1573_v7 }
 0x1e7   :  { %697 = vperm.xlu1 %1515, %v443_v33  }
 0x1e9   :  { %886 = vperm.xlu0 %1537, %v1805_v10  }
 0x1eb   :  { %1517 = vset.pattern.permute.xlu1 %v1576_v25 }
 0x1ec   :  { %914 = vperm.xlu1 %1517, %v443_v33  }
 0x1ed   :  { %1546 = vset.pattern.permute.xlu0 %v1577_v30 }
 0x1ee   :  { %1007 = vperm.xlu0 %1546, %v1812_v14  }
 0x1f0   :  { %1518 = vset.pattern.permute.xlu1 %v1577_v30 }
 0x1f1   :  { %1027 = vperm.xlu1 %1518, %v443_v33  }
 0x1f2   :  { %999 = vperm.xlu0 %1546, %v1805_v10  }
 0x1f5   :  { %1519 = vset.pattern.permute.xlu1 %v1573_v7 }
 0x1f6   :  { %712 = vperm.xlu1 %1519, %v1853_v35  }
 0x1fa   :  { %1520 = vset.pattern.permute.xlu1 %v1576_v25 }
 0x1fb   :  { %926 = vperm.xlu1 %1520, %v1853_v35  }
 0x1ff   :  { %1521 = vset.pattern.permute.xlu1 %v1577_v30 }
 0x200   :  { %1039 = vperm.xlu1 %1521, %v1853_v35  }
 0x204   :  { %1523 = vset.pattern.permute.xlu1 %v1574_v17 }
 0x205   :  { %809 = vperm.xlu1 %1523, %v453_v37  }
 0x209   :  { %1525 = vset.pattern.permute.xlu1 %v1577_v30 }
 0x20a   :  { %1035 = vperm.xlu1 %1525, %v453_v37   ;;  %v1912_v44 = vpop.permute.xlu0 %662 }
 0x20e   :  { %v673_v45 = vpop.permute.xlu1 %672  ;;  %1527 = vset.pattern.permute.xlu1 %v1574_v17 }
 0x20f   :  { %821 = vperm.xlu1 %1527, %v1866_v39   ;;  %v738_v50 = vmul.f32 %v673_v45, %v642_v47 }
 0x210   :  { %v778_v46 = vpop.permute.xlu0 %777 }
 0x211   :  { %v834_v63 = vmul.f32 %v1226_v58, %v778_v46 }
 0x213   :  { %v782_v49 = vpop.permute.xlu1 %781  ;;  %1529 = vset.pattern.permute.xlu1 %v1577_v30 }
 0x214   :  { %v835_v51 = vmul.f32 %v1227_v48, %v782_v49  ;;  %1047 = vperm.xlu1 %1529, %v1866_v39   ;;  %v790_v52 = vpop.permute.xlu0 %789  ;;  %v646_v39 = vld [vmem:[%s2269_s7 + $0x38] sm:$0xff] }
 0x215   :  { %v837_v5 = vmul.f32 %v1229_v1, %v790_v52  ;;  %v1230_v52 = vld [vmem:[%s2269_s7 + $0xb0] sm:$0xff] }
 0x216   :  { %v851_v53 = vadd.f32 %v835_v51, %v738_v50  ;;  %v645_v51 = vld [vmem:[%s2269_s7 + $0x30] sm:$0xff] }
 0x218   :  { %v895_v55 = vpop.permute.xlu1 %894  ;;  %1530 = vset.pattern.permute.xlu1 %v1573_v7 }
 0x219   :  { %v948_v56 = vmul.f32 %v1243_v54, %v895_v55  ;;  %717 = vperm.xlu1 %1530, %v1876_v41   ;;  %v678_v57 = vpop.permute.xlu0 %677 }
 0x21a   :  { %v739_v34 = vmul.f32 %v678_v57, %v643_v29  ;;  %v1246_v57 = vld [vmem:[%s2269_s7 + $0x130] sm:$0xff] }
 0x21b   :  { %v1932_v59 = vadd.f32 %v948_v56, %v851_v53 }
 0x21d   :  { %1531 = vset.pattern.permute.xlu1 %v1574_v17  ;;  %v668_v61 = vpop.permute.xlu1 %667  ;;  %v693_v62 = vpop.permute.xlu0 %692 }
 0x21e   :  { %v737_v0 = vmul.f32 %v668_v61, %v641_v60  ;;  %817 = vperm.xlu1 %1531, %v1876_v41   ;;  %v1262_v60 = vld [vmem:[%s2269_s7 + $0x1b0] sm:$0xff] }
 0x220   :  { %v1945_v3 = vadd.f32 %v834_v63, %v737_v0 }
 0x221   :  { %v683_v4 = vpop.permute.xlu1 %682 }
 0x222   :  { %v740_v6 = vmul.f32 %v683_v4, %v644_v2  ;;  %1532 = vset.pattern.permute.xlu1 %v1576_v25  ;;  %v1948_v9 = vpop.permute.xlu0 %1019  ;;  %v556_v4 = vld [vmem:[%s2267_s5 + $0x18] sm:$0xff] }
 0x223   :  { %930 = vperm.xlu1 %1532, %v1876_v41   ;;  %1443 = vmatpush3.msra.mxu1 %v556_v4 }
 0x224   :  { %v853_v11 = vadd.f32 %v837_v5, %v740_v6  ;;  %v1233_v5 = vld [vmem:[%s2269_s7 + $0xc8] sm:$0xff]  ;;  %1444 = vmatprep.subr.mxu1 %v1572_v21  ;;  %v555_v6 = vld [vmem:[%s2267_s5 + $0x10] sm:$0xff] }
 0x225   :  { %1445 = vmatpush3.msra.mxu1 %v555_v6 }
 0x226   :  { %v903_v14 = vpop.permute.xlu1 %902  ;;  %v1954_v15 = vpop.permute.xlu0 %1031  ;;  %1446 = vmatprep.subr.mxu1 %v1572_v21 }
 0x227   :  { %v950_v19 = vmul.f32 %v1245_v13, %v903_v14  ;;  %942 = vperm.xlu1 %1532, %v1882_v43   ;;  %v742_v43 = vmul.f32 %v693_v62, %v646_v39  ;;  %v1064_v62 = vmul.f32 %v1262_v60, %v1948_v9  ;;  %v1244_v39 = vld [vmem:[%s2269_s7 + $0x120] sm:$0xff] }
 0x229   :  { %v966_v20 = vadd.f32 %v950_v19, %v853_v11  ;;  %v554_v11 = vld [vmem:[%s2267_s5 + $0x8] sm:$0xff]  ;;  %v1247_v19 = vld [vmem:[%s2269_s7 + $0x138] sm:$0xff] }
 0x22a   :  { %1447 = vmatpush3.msra.mxu1 %v554_v11 }
 0x22b   :  { %1538 = vset.pattern.permute.xlu1 %v1573_v7  ;;  %v1016_v26 = vpop.permute.xlu1 %1015  ;;  %v1962_v27 = vpop.permute.xlu0 %801  ;;  %1448 = vmatprep.subr.mxu1 %v1572_v21 }
 0x22c   :  { %v1063_v28 = vmul.f32 %v1261_v23, %v1016_v26  ;;  %727 = vperm.xlu1 %1538, %v473_v24   ;;  %v1441_v26 = vpop.f32.mrf.mxu1 }
 0x22d   :  { %v1255_v26 = vld [vmem:[%s2269_s7 + $0x178] sm:$0xff] }
 0x22e   :  { %v1967_v31 = vadd.f32 %v1063_v28, %v966_v20  ;;  %v552_v20 = vmul.f32 0.015625, %v548_v18  ;;  %v1263_v28 = vld [vmem:[%s2269_s7 + $0x1b8] sm:$0xff] }
 0x22f   :  { %v1972_v33 = vpop.permute.xlu0 %813 }
 0x230   :  { %1539 = vset.pattern.permute.xlu1 %v1574_v17  ;;  %v786_v8 = vpop.permute.xlu1 %785 }
 0x231   :  { %v836_v35 = vmul.f32 %v1228_v32, %v786_v8  ;;  %825 = vperm.xlu1 %1539, %v473_v24   ;;  %v1265_v32 = vld [vmem:[%s2269_s7 + $0x1c8] sm:$0xff] }
 0x233   :  { %v1975_v36 = vadd.f32 %v836_v35, %v739_v34 }
 0x234   :  { %v1977_v37 = vpop.permute.xlu0 %707 }
 0x235   :  { %1540 = vset.pattern.permute.xlu1 %v1576_v25  ;;  %v1980_v38 = vpop.permute.xlu1 %1011 }
 0x236   :  { %938 = vperm.xlu1 %1540, %v473_v24  }
 0x239   :  { %v1988_v41 = vpop.permute.xlu0 %922 }
 0x23a   :  { %1541 = vset.pattern.permute.xlu1 %v1577_v30  ;;  %v798_v42 = vpop.permute.xlu1 %797 }
 0x23b   :  { %v839_v45 = vmul.f32 %v1231_v40, %v798_v42  ;;  %1051 = vperm.xlu1 %1541, %v473_v24   ;;  %v1249_v24 = vld [vmem:[%s2269_s7 + $0x148] sm:$0xff] }
 0x23d   :  { %v1991_v46 = vadd.f32 %v839_v45, %v742_v43  ;;  %v1067_v43 = vmul.f32 %v1265_v32, %v1954_v15  ;;  %v1260_v45 = vld [vmem:[%s2269_s7 + $0x1a0] sm:$0xff] }
 0x23e   :  { %v1993_v47 = vpop.permute.xlu0 %722  ;;  %v1232_v15 = vld [vmem:[%s2269_s7 + $0xc0] sm:$0xff] }
 0x23f   :  { %1542 = vset.pattern.permute.xlu1 %v1574_v17  ;;  %v1996_v48 = vpop.permute.xlu1 %1023  ;;  %v840_v60 = vmul.f32 %v1232_v15, %v1962_v27 }
 0x240   :  { %773 = vperm.xlu1 %1542, %v1805_v10   ;;  %v1065_v40 = vmul.f32 %v1263_v28, %v1996_v48 }
 0x243   :  { %v1999_v49 = vpop.permute.xlu0 %934 }
 0x244   :  { %1543 = vset.pattern.permute.xlu1 %v1576_v25  ;;  %v688_v50 = vpop.permute.xlu1 %687 }
 0x245   :  { %890 = vperm.xlu1 %1543, %v1815_v16   ;;  %v741_v54 = vmul.f32 %v688_v50, %v645_v51 }
 0x248   :  { %v2009_v53 = vpop.permute.xlu0 %1043 }
 0x249   :  { %1544 = vset.pattern.permute.xlu1 %v1573_v7  ;;  %v794_v10 = vpop.permute.xlu1 %793 }
 0x24a   :  { %v838_v55 = vmul.f32 %v1230_v52, %v794_v10  ;;  %657 = vperm.xlu1 %1544, %v1808_v12  }
 0x24c   :  { %v854_v56 = vadd.f32 %v838_v55, %v741_v54 }
 0x24d   :  { %v2016_v58 = vpop.permute.xlu0 %732 }
 0x24e   :  { %v907_v61 = vpop.permute.xlu1 %906  ;;  %1545 = vset.pattern.permute.xlu1 %v1574_v17  ;;  %v648_v17 = vld [vmem:[%s2269_s7 + $0x48] sm:$0xff] }
 0x24f   :  { %v951_v7 = vmul.f32 %v1246_v57, %v907_v61  ;;  %769 = vperm.xlu1 %1545, %v1808_v12   ;;  %v1248_v57 = vld [vmem:[%s2269_s7 + $0x140] sm:$0xff] }
 0x251   :  { %v967_v63 = vadd.f32 %v951_v7, %v854_v56 }
 0x252   :  { %v2024_v0 = vpop.permute.xlu0 %829 }
 0x253   :  { %v2026_v1 = vadd.f32 %v1064_v62, %v967_v63  ;;  %v703_v2 = vpop.permute.xlu1 %702  ;;  %1547 = vset.pattern.permute.xlu1 %v1577_v30 }
 0x254   :  { %1003 = vperm.xlu1 %1547, %v1815_v16   ;;  %v744_v13 = vmul.f32 %v703_v2, %v648_v17  ;;  %v1264_v2 = vld [vmem:[%s2269_s7 + $0x1c0] sm:$0xff] }
 0x257   :  { %v2043_v16 = vpop.permute.xlu0 %1055 }
 0x258   :  { %v806_v9 = vpop.permute.xlu1 %805  ;;  %1548 = vset.pattern.permute.xlu1 %v1576_v25  ;;  %v553_v25 = vld [vmem:[%s2267_s5] sm:$0xff] }
 0x259   :  { %v841_v14 = vmul.f32 %v1233_v5, %v806_v9  ;;  %882 = vperm.xlu1 %1548, %v1808_v12   ;;  %1449 = vmatpush3.msra.mxu1 %v553_v25 }
 0x25a   :  { %1451 = vmatmul.mubr.msk.f32.vlgmr.msra.gmra.mxu1 %vm287_vm2, %v552_v20  ;;  %v1239_v20 = vld [vmem:[%s2269_s7 + $0xf8] sm:$0xff] }
 0x25b   :  { %v857_v23 = vadd.f32 %v841_v14, %v744_v13 }
 0x25c   :  { %v911_v29 = vpop.permute.xlu0 %910 }
 0x25d   :  { %v952_v8 = vmul.f32 %v1247_v19, %v911_v29  ;;  %v919_v34 = vpop.permute.xlu1 %918  ;;  %1549 = vset.pattern.permute.xlu1 %v1577_v30  ;;  %v654_v19 = vld [vmem:[%s2269_s7 + $0x78] sm:$0xff] }
 0x25e   :  { %v954_v35 = vmul.f32 %v1249_v24, %v919_v34  ;;  %995 = vperm.xlu1 %1549, %v1808_v12   ;;  %v647_v12 = vld [vmem:[%s2269_s7 + $0x40] sm:$0xff]  ;;  %v750_v25 = vmul.f32 %v2016_v58, %v654_v19  ;;  %v1271_v29 = vld [vmem:[%s2269_s7 + $0x1f8] sm:$0xff]  ;;  %v1237_v58 = vld [vmem:[%s2269_s7 + $0xe8] sm:$0xff] }
 0x25f   :  { %v968_v42 = vadd.f32 %v952_v8, %v1991_v46  ;;  %v1062_v46 = vmul.f32 %v1260_v45, %v1980_v38  ;;  %v1073_v34 = vmul.f32 %v1271_v29, %v2043_v16  ;;  %v1238_v16 = vld [vmem:[%s2269_s7 + $0xf0] sm:$0xff] }
 0x260   :  { %v970_v50 = vadd.f32 %v954_v35, %v857_v23  ;;  %v899_v51 = vpop.permute.xlu0 %898  ;;  %v847_v23 = vmul.f32 %v1239_v20, %v2024_v0  ;;  %v1250_v29 = vld [vmem:[%s2269_s7 + $0x150] sm:$0xff] }
 0x261   :  { %v2079_v30 = vadd.f32 %v1065_v40, %v968_v42  ;;  %v949_v52 = vmul.f32 %v1244_v39, %v899_v51  ;;  %v652_v42 = vld [vmem:[%s2269_s7 + $0x68] sm:$0xff]  ;;  %v653_v51 = vld [vmem:[%s2269_s7 + $0x70] sm:$0xff] }
 0x262   :  { %v2084_v10 = vadd.f32 %v1067_v43, %v970_v50  ;;  %v698_v48 = vpop.permute.xlu1 %697  ;;  %v863_v28 = vadd.f32 %v847_v23, %v750_v25  ;;  %v748_v45 = vmul.f32 %v1993_v47, %v652_v42  ;;  %v1236_v50 = vld [vmem:[%s2269_s7 + $0xe0] sm:$0xff]  ;;  %v1234_v47 = vld [vmem:[%s2269_s7 + $0xd0] sm:$0xff] }
 0x263   :  { %v965_v54 = vadd.f32 %v949_v52, %v1975_v36  ;;  %v743_v55 = vmul.f32 %v698_v48, %v647_v12  ;;  %v1254_v52 = vld [vmem:[%s2269_s7 + $0x170] sm:$0xff]  ;;  %v1253_v12 = vld [vmem:[%s2269_s7 + $0x168] sm:$0xff] }
 0x265   :  { %v2091_v56 = vadd.f32 %v1062_v46, %v965_v54  ;;  %v856_v7 = vadd.f32 %v840_v60, %v743_v55  ;;  %v651_v54 = vld [vmem:[%s2269_s7 + $0x60] sm:$0xff]  ;;  %v650_v60 = vld [vmem:[%s2269_s7 + $0x58] sm:$0xff] }
 0x266   :  { %v1252_v55 = vld [vmem:[%s2269_s7 + $0x160] sm:$0xff] }
 0x267   :  { %v915_v61 = vpop.permute.xlu1 %914 }
 0x268   :  { %v953_v62 = vmul.f32 %v1248_v57, %v915_v61  ;;  %v649_v57 = vld [vmem:[%s2269_s7 + $0x50] sm:$0xff] }
 0x269   :  { %v745_v25 = vmul.f32 %v1977_v37, %v649_v57  ;;  %v1268_v37 = vld [vmem:[%s2269_s7 + $0x1e0] sm:$0xff] }
 0x26a   :  { %v969_v63 = vadd.f32 %v953_v62, %v856_v7 }
 0x26c   :  { %v1028_v38 = vpop.permute.xlu1 %1027 }
 0x26d   :  { %v1066_v4 = vmul.f32 %v1264_v2, %v1028_v38  ;;  %v1269_v2 = vld [vmem:[%s2269_s7 + $0x1e8] sm:$0xff]  ;;  %v1270_v38 = vld [vmem:[%s2269_s7 + $0x1f0] sm:$0xff] }
 0x26f   :  { %v2100_v36 = vadd.f32 %v1066_v4, %v969_v63  ;;  %v958_v63 = vmul.f32 %v1253_v12, %v1999_v49  ;;  %v1235_v4 = vld [vmem:[%s2269_s7 + $0xd8] sm:$0xff] }
 0x270   :  { %v1251_v49 = vld [vmem:[%s2269_s7 + $0x158] sm:$0xff] }
 0x271   :  { %v713_v17 = vpop.permute.xlu1 %712 }
 0x272   :  { %v746_v23 = vmul.f32 %v713_v17, %v650_v60  ;;  %v1267_v17 = vld [vmem:[%s2269_s7 + $0x1d8] sm:$0xff] }
 0x276   :  { %v2102_v5 = vpop.permute.xlu1 %926 }
 0x27b   :  { %v2104_v6 = vpop.permute.xlu1 %1039 }
 0x27c   :  { %v1069_v42 = vmul.f32 %v1267_v17, %v2104_v6  ;;  %v887_v6 = vpop.permute.xlu0 %886 }
 0x280   :  { %v810_v9 = vpop.permute.xlu1 %809 }
 0x285   :  { %v2106_v11 = vpop.permute.xlu1 %1035 }
 0x28a   :  { %v822_v27 = vpop.permute.xlu1 %821 }
 0x28b   :  { %v845_v43 = vmul.f32 %v1237_v58, %v822_v27  ;;  %v842_v27 = vmul.f32 %v1234_v47, %v810_v9  ;;  %v1266_v58 = vld [vmem:[%s2269_s7 + $0x1d0] sm:$0xff]  ;;  %v1008_v47 = vpop.permute.xlu0 %1007 }
 0x28d   :  { %v861_v46 = vadd.f32 %v845_v43, %v748_v45 }
 0x28f   :  { %v1048_v13 = vpop.permute.xlu1 %1047 }
 0x294   :  { %v718_v14 = vpop.permute.xlu1 %717 }
 0x295   :  { %v747_v19 = vmul.f32 %v718_v14, %v651_v54  ;;  %v843_v14 = vmul.f32 %v1235_v4, %v1972_v33  ;;  %v1070_v33 = vmul.f32 %v1268_v37, %v2009_v53  ;;  %v1224_v4 = vld [vmem:[%s2269_s7 + $0x80] sm:$0xff] }
 0x299   :  { %v818_v18 = vpop.permute.xlu1 %817 }
 0x29a   :  { %v844_v61 = vmul.f32 %v1236_v50, %v818_v18  ;;  %v1068_v50 = vmul.f32 %v1266_v58, %v2106_v11  ;;  %v1225_v11 = vld [vmem:[%s2269_s7 + $0x88] sm:$0xff] }
 0x29e   :  { %v931_v24 = vpop.permute.xlu1 %930 }
 0x29f   :  { %v957_v20 = vmul.f32 %v1252_v55, %v931_v24  ;;  %v956_v24 = vmul.f32 %v1251_v49, %v2102_v5  ;;  %v1256_v49 = vld [vmem:[%s2269_s7 + $0x180] sm:$0xff] }
 0x2a2   :  { %v943_v32 = vpop.permute.xlu1 %942 }
 0x2a3   :  { %v960_v8 = vmul.f32 %v1255_v26, %v943_v32  ;;  %v974_v26 = vadd.f32 %v958_v63, %v861_v46  ;;  %v1071_v32 = vmul.f32 %v1269_v2, %v1048_v13  ;;  %v955_v13 = vmul.f32 %v1250_v29, %v1988_v41 }
 0x2a5   :  { %v976_v35 = vadd.f32 %v960_v8, %v863_v28  ;;  %v860_v8 = vadd.f32 %v844_v61, %v747_v19  ;;  %v1087_v43 = vadd.f32 %v1071_v32, %v974_v26 }
 0x2a7   :  { %v1089_v39 = vadd.f32 %v1073_v34, %v976_v35  ;;  %v728_v40 = vpop.permute.xlu1 %727  ;;  %v858_v35 = vadd.f32 %v842_v27, %v745_v25 }
 0x2a8   :  { %v749_v7 = vmul.f32 %v728_v40, %v653_v51 }
 0x2a9   :  { %1454 = vmatpush3.msra.mxu0 %v1089_v39  ;;  %v973_v39 = vadd.f32 %v957_v20, %v860_v8  ;;  %v971_v45 = vadd.f32 %v955_v13, %v858_v35 }
 0x2aa   :  { %1455 = vmatprep.subr.mxu0 %v1572_v21 }
 0x2ab   :  { %v1086_v51 = vadd.f32 %v1070_v33, %v973_v39 }
 0x2ac   :  { %v826_v0 = vpop.permute.xlu1 %825 }
 0x2ad   :  { %v846_v48 = vmul.f32 %v1238_v16, %v826_v0  ;;  %v859_v0 = vadd.f32 %v843_v14, %v746_v23 }
 0x2af   :  { %v862_v18 = vadd.f32 %v846_v48, %v749_v7  ;;  %v972_v5 = vadd.f32 %v956_v24, %v859_v0  ;;  %v640_v48 = vld [vmem:[%s2269_s7 + $0x8] sm:$0xff] }
 0x2b0   :  { %v736_v54 = vmul.f32 %v1912_v44, %v640_v48  ;;  %v1258_v44 = vld [vmem:[%s2269_s7 + $0x190] sm:$0xff] }
 0x2b1   :  { %v939_v15 = vpop.permute.xlu1 %938  ;;  %v1085_v41 = vadd.f32 %v1069_v42, %v972_v5 }
 0x2b2   :  { %v959_v62 = vmul.f32 %v1254_v52, %v939_v15  ;;  %v1084_v52 = vadd.f32 %v1068_v50, %v971_v45  ;;  %v1259_v15 = vld [vmem:[%s2269_s7 + $0x198] sm:$0xff] }
 0x2b3   :  { %v1061_v57 = vmul.f32 %v1259_v15, %v1008_v47 }
 0x2b4   :  { %v975_v34 = vadd.f32 %v959_v62, %v862_v18  ;;  %v1257_v62 = vld [vmem:[%s2269_s7 + $0x188] sm:$0xff] }
 0x2b5   :  { %v1077_v7 = vadd.f32 %v1061_v57, %v1932_v59 }
 0x2b6   :  { %v1052_v28 = vpop.permute.xlu1 %1051 }
 0x2b7   :  { %v1072_v9 = vmul.f32 %v1270_v38, %v1052_v28 }
 0x2b9   :  { %v1088_v40 = vadd.f32 %v1072_v9, %v975_v34  ;;  %v1222_v34 = vld [vmem:[%s2268_s6] ss:$0 sm:$0xff] }
 0x2bb   :  { %1456 = vmatpush3.msra.mxu0 %v1088_v40  ;;  %v774_v16 = vpop.permute.xlu1 %773 }
 0x2bc   :  { %1457 = vmatprep.subr.mxu0 %v1572_v21  ;;  %v833_v46 = vmul.f32 %v1225_v11, %v774_v16 }
 0x2bd   :  { %1458 = vmatpush3.msra.mxu0 %v1087_v43 }
 0x2be   :  { %1459 = vmatprep.subr.mxu0 %v1572_v21  ;;  %v849_v60 = vadd.f32 %v833_v46, %v736_v54 }
 0x2bf   :  { %1460 = vmatpush3.msra.mxu0 %v1086_v51 }
 0x2c0   :  { %1461 = vmatprep.subr.mxu0 %v1572_v21  ;;  %v891_v53 = vpop.permute.xlu1 %890 }
 0x2c1   :  { %1462 = vmatpush3.msra.mxu0 %v1085_v41 }
 0x2c2   :  { %1463 = vmatprep.subr.mxu0 %v1572_v21 }
 0x2c3   :  { %1464 = vmatpush3.msra.mxu0 %v1084_v52 }
 0x2c4   :  { %1465 = vmatprep.subr.mxu0 %v1572_v21 }
 0x2c5   :  { %1466 = vmatpush3.msra.mxu0 %v2084_v10  ;;  %v658_v12 = vpop.permute.xlu1 %657  ;;  %v1242_v10 = vld [vmem:[%s2269_s7 + $0x110] sm:$0xff] }
 0x2c6   :  { %1467 = vmatprep.subr.mxu0 %v1572_v21  ;;  %v947_v61 = vmul.f32 %v1242_v10, %v891_v53 }
 0x2c7   :  { %1468 = vmatpush3.msra.mxu0 %v2100_v36  ;;  %v1241_v36 = vld [vmem:[%s2269_s7 + $0x108] sm:$0xff] }
 0x2c8   :  { %1469 = vmatprep.subr.mxu0 %v1572_v21 }
 0x2c9   :  { %1470 = vmatpush3.msra.mxu0 %v2079_v30  ;;  %v946_v30 = vmul.f32 %v1241_v36, %v887_v6 }
 0x2ca   :  { %1471 = vmatprep.subr.mxu0 %v1572_v21  ;;  %v770_v55 = vpop.permute.xlu1 %769 }
 0x2cb   :  { %1472 = vmatpush3.msra.mxu0 %v2026_v1  ;;  %v1000_v1 = vpop.permute.xlu0 %999  ;;  %v962_v2 = vadd.f32 %v946_v30, %v849_v60  ;;  %v832_v20 = vmul.f32 %v1224_v4, %v770_v55 }
 0x2cc   :  { %1473 = vmatprep.subr.mxu0 %v1572_v21  ;;  %v1059_v59 = vmul.f32 %v1257_v62, %v1000_v1 }
 0x2cd   :  { %1474 = vmatpush3.msra.mxu0 %v1967_v31  ;;  %v963_v31 = vadd.f32 %v947_v61, %v1945_v3  ;;  %v1240_v3 = vld [vmem:[%s2269_s7 + $0x100] sm:$0xff] }
 0x2ce   :  { %1475 = vmatprep.subr.mxu0 %v1572_v21  ;;  %v1075_v19 = vadd.f32 %v1059_v59, %v962_v2 }
 0x2cf   :  { %1476 = vmatpush3.msra.mxu0 %v2091_v56  ;;  %v1004_v63 = vpop.permute.xlu1 %1003  ;;  %v639_v56 = vld [vmem:[%s2269_s7] sm:$0xff]  ;;  %s1177_s7 = sshll.u32 %s1578_s28, 4  ;;  %s1178_s7 = int_to_ptr.vmem [resolvable:$true] %s1177_s7 }
 0x2d0   :  { %v1060_v38 = vmul.f32 %v1258_v44, %v1004_v63  ;;  %1477 = vmatprep.subr.mxu0 %v1572_v21  ;;  %v735_v25 = vmul.f32 %v658_v12, %v639_v56  ;;  %s1550_s29 = scalar_lea.vmem %s1178_s7, 32  ;;  %p1555_p1 = scmp.lt.s32.totalorder %s1178_s7, %s1178_s7 }
 0x2d1   :  { %1478 = vmatpush3.msra.mxu0 %v1077_v7  ;;  %p1551_p0 = scmp.ne.s32.totalorder %s1178_s7, %s1550_s29  ;;  %p1556_p2 = scmp.lt.s32.totalorder %s1550_s29, %s1550_s29 }
 0x2d2   :  { %v1076_v27 = vadd.f32 %v1060_v38, %v963_v31  ;;  %1479 = vmatprep.subr.mxu0 %v1572_v21  ;;  %v848_v26 = vadd.f32 %v832_v20, %v735_v25 }
 0x2d3   :  { %p1557_p3 = por %p1556_p2, %p1555_p1 }
 0x2d4   :  { %1480 = vmatpush3.msra.mxu0 %v1076_v27  ;;  %v883_v18 = vpop.permute.xlu1 %882 }
 0x2d5   :  { %1481 = vmatprep.subr.mxu0 %v1572_v21  ;;  %v945_v23 = vmul.f32 %v1240_v3, %v883_v18  ;;  %p1558_p4 = pnand %p1557_p3, %p1551_p0 }
 0x2d6   :  { %1482 = vmatpush3.msra.mxu0 %v1075_v19 }
 0x2d7   :  { %1483 = vmatprep.subr.mxu0 %v1572_v21  ;;  %v961_v29 = vadd.f32 %v945_v23, %v848_v26 }
 0x2d9   :  { %v996_v28 = vpop.permute.xlu1 %995 }
 0x2da   :  { %v1058_v32 = vmul.f32 %v1256_v49, %v996_v28 }
 0x2dc   :  { %v1074_v8 = vadd.f32 %v1058_v32, %v961_v29 }
 0x2de   :  { %1484 = vmatpush3.msra.mxu0 %v1074_v8 }
 0x2df   :  { %1486 = vmatmul.mubr.f32.vlgmr.msra.gmra.mxu0 %v1827_v22 }
 0x31a   :  { %v633_v9 = vpop.f32.mrf.mxu1 }
 0x31b   :  { %v634_v14 = vadd.f32 %v1222_v34, %v633_v9 }
 0x31c   :  { %v1452_v37 = vpop.f32.mrf.mxu1 }
 0x31d   :  { %638 = vst.msk [vmem:[#allocation2] sm:$0x3] %vm637_vm4, %v634_v14 }
 0x31e   :  { %1561 = shalt.err (!%p1558_p4)
}
 0x31f   :  { %1180 = dma.vmem_to_hbm [thread:$0]  %s1178_s7, 32, %s2273_s11, [#allocation3]   ;;  %v1272_v21 = vld [vmem:[%s2270_s8] ss:$0 sm:$0xff]  ;;  %vm1167_vm5 = vcmask 189440  }
 0x39f   :  { %v1163_v22 = vpop.f32.mrf.mxu0 }
 0x3a0   :  { %v1164_v17 = vadd.f32 %v1272_v21, %v1163_v22 }
 0x3a1   :  { %v1487_v24 = vpop.f32.mrf.mxu0 }
 0x3a2   :  { %1168 = vst.msk [vmem:[%s2272_s10] sm:$0x3] %vm1167_vm5, %v1164_v17 }
 0x3a3   :  { %1570 = dma.done.wait [#allocation3], 32  }
 0x3a4   :  { %1571 = vsyncadd [#allocation3], 4294967264 }
 0x3a5   :  { %1186 = vsyncpa [#allocation3], 1 }

</bundles_post_ra>
